<compile_context>
chip_gen: v6e
topology: v6e:2x2x1
jax: 0.10.0
libtpu: 0.0.40
codegen_flags: <defaults>
</compile_context>

<pallas_src>
import functools

import jax
import jax.numpy as jnp
from jax.experimental import pallas as pl
from jax.experimental.pallas import tpu as pltpu


# ----------------------------- Pallas kernel --------------------------------
def lstm_layer_kernel(x_ref, mask_ref, wih_ref, whh_ref, b_ref,
                      out_ref, hn_ref, cn_ref, xw_ref,
                      *, hidden_size, seq_len, batch):
    H, T, B = hidden_size, seq_len, batch

    # Hoisted input projection: one (T*B, Hin) @ (Hin, 4H) MXU matmul + bias,
    # computed once per direction, stored in VMEM scratch.
    xw_ref[...] = (jnp.dot(x_ref[...], wih_ref[...],
                           preferred_element_type=jnp.float32)
                   + b_ref[...])                              # (T*B, 4H)

    whh = whh_ref[...]                                        # (H, 4H) held in vregs
    h = jnp.zeros((B, H), jnp.float32)
    c = jnp.zeros((B, H), jnp.float32)

    # Fully unrolled serial recurrence: only h @ W_hh + elementwise per step.
    for t in range(T):
        lo, hi = t * B, (t + 1) * B
        gates = xw_ref[lo:hi, :] + jnp.dot(h, whh,
                                           preferred_element_type=jnp.float32)
        sig = jax.nn.sigmoid(gates)        # one full-width EUP pass over (B, 4H)
        th = jnp.tanh(gates)               # one full-width EUP pass over (B, 4H)
        i_g = sig[:, 0 * H:1 * H]
        f_g = sig[:, 1 * H:2 * H]
        g_g = th[:, 2 * H:3 * H]
        o_g = sig[:, 3 * H:4 * H]

        c_new = f_g * c + i_g * g_g
        h_new = o_g * jnp.tanh(c_new)

        # packed-sequence semantics: masked (t >= length) steps carry state,
        # and their outputs are zero after pad_packed_sequence.
        m = mask_ref[lo:hi, :]                                # (B, H) float {0,1}
        h = h + m * (h_new - h)
        c = c + m * (c_new - c)
        out_ref[lo:hi, :] = m * h_new

    # final states written exactly once
    hn_ref[...] = h
    cn_ref[...] = c


def lstm_layer_bidir(x, mask_fwd_flat, mask_bwd_flat, wih_both, whh_both, b_both):
    """One bidirectional LSTM layer over the full (masked) sequence: one pallas_call."""
    T, B, Hin = x.shape
    H = whh_both.shape[1]
    TB = T * B

    # direction 1 gets time-reversed inputs so the kernel is direction-agnostic
    x_both = jnp.stack([x.reshape(TB, Hin),
                        x[::-1].reshape(TB, Hin)], axis=0)        # (2, TB, Hin)
    mask_both = jnp.stack([mask_fwd_flat, mask_bwd_flat], axis=0)  # (2, TB, H)

    kernel = functools.partial(lstm_layer_kernel,
                               hidden_size=H, seq_len=T, batch=B)
    per_dir = lambda d: (d, 0, 0)

    out, hn, cn = pl.pallas_call(
        kernel,
        out_shape=(jax.ShapeDtypeStruct((2, TB, H), jnp.float32),
                   jax.ShapeDtypeStruct((2, B, H), jnp.float32),
                   jax.ShapeDtypeStruct((2, B, H), jnp.float32)),
        grid=(2,),
        in_specs=[pl.BlockSpec((None, TB, Hin), per_dir),      # x (flattened time*batch)
                  pl.BlockSpec((None, TB, H), per_dir),        # validity mask
                  pl.BlockSpec((None, Hin, 4 * H), per_dir),   # W_ih^T
                  pl.BlockSpec((None, H, 4 * H), per_dir),     # W_hh^T
                  pl.BlockSpec((None, 1, 4 * H), per_dir)],    # bias (b_ih + b_hh)
        out_specs=(pl.BlockSpec((None, TB, H), per_dir),
                   pl.BlockSpec((None, B, H), per_dir),
                   pl.BlockSpec((None, B, H), per_dir)),
        scratch_shapes=[pltpu.VMEM((TB, 4 * H), jnp.float32)],
        compiler_params=pltpu.CompilerParams(
            dimension_semantics=("parallel",)),                # fwd/bwd -> 2 TCs on v7x
    )(x_both, mask_both, wih_both, whh_both, b_both)

    out_f = out[0].reshape(T, B, H)
    out_b = out[1].reshape(T, B, H)[::-1]                      # un-reverse bwd time
    return out_f, out_b, hn, cn


# --------------------------- Encoder (JAX glue) ------------------------------
def lstm_encoder_forward(input_seq, input_lengths, emb_table, params,
                         hidden_size, num_layers):
    T, B = input_seq.shape
    H = hidden_size
    # embedding lookup is glue (gather), kept in plain JAX
    x = emb_table[input_seq]                                   # (T, B, H)

    t_idx = jnp.arange(T, dtype=jnp.int32).reshape(T, 1, 1)
    valid = (t_idx < input_lengths.reshape(1, B, 1).astype(jnp.int32))
    mask = jnp.broadcast_to(valid.astype(jnp.float32), (T, B, H))
    mask_f = mask.reshape(T * B, H)
    mask_b = mask[::-1].reshape(T * B, H)

    h_list, c_list = [], []
    for layer in range(num_layers):
        wih_both, whh_both, b_both = params[layer]
        out_f, out_b, hn, cn = lstm_layer_bidir(x, mask_f, mask_b,
                                                wih_both, whh_both, b_both)
        x = jnp.concatenate([out_f, out_b], axis=-1)           # (T, B, 2H)
        h_list += [hn[0], hn[1]]
        c_list += [cn[0], cn[1]]
    outputs = x[:, :, :H] + x[:, :, H:]
    hidden = (jnp.stack(h_list, axis=0), jnp.stack(c_list, axis=0))
    return outputs, hidden


# --------------------------- Pure-JAX reference ------------------------------
def _ref_dir(x, lengths, wih_t, whh_t, b, reverse):
    T, B, _ = x.shape
    H = whh_t.shape[0]
    h = jnp.zeros((B, H), jnp.float32)
    c = jnp.zeros((B, H), jnp.float32)
    outs = [None] * T
    order = range(T - 1, -1, -1) if reverse else range(T)
    for t in order:
        gates = x[t] @ wih_t + h @ whh_t + b[0]
        i_g = jax.nn.sigmoid(gates[:, 0 * H:1 * H])
        f_g = jax.nn.sigmoid(gates[:, 1 * H:2 * H])
        g_g = jnp.tanh(gates[:, 2 * H:3 * H])
        o_g = jax.nn.sigmoid(gates[:, 3 * H:4 * H])
        c_new = f_g * c + i_g * g_g
        h_new = o_g * jnp.tanh(c_new)
        m = (t < lengths).reshape(B, 1)
        h = jnp.where(m, h_new, h)
        c = jnp.where(m, c_new, c)
        outs[t] = jnp.where(m, h_new, 0.0)
    return jnp.stack(outs), h, c


def ref_encoder(input_seq, input_lengths, emb_table, params, H, num_layers):
    x = emb_table[input_seq]
    h_list, c_list = [], []
    for layer in range(num_layers):
        wih_both, whh_both, b_both = params[layer]
        dir_outs = []
        for d in range(2):
            o, hn, cn = _ref_dir(x, input_lengths, wih_both[d], whh_both[d],
                                 b_both[d], d == 1)
            dir_outs.append(o)
            h_list.append(hn)
            c_list.append(cn)
        x = jnp.concatenate(dir_outs, axis=-1)
    return (x[:, :, :H] + x[:, :, H:],
            (jnp.stack(h_list, 0), jnp.stack(c_list, 0)))


# ------------------------------------ main -----------------------------------
if __name__ == "__main__":
    T, B = 8, 8
    H = 32            # hidden_size (4H = 128 -> lane aligned)
    NUM_LAYERS = 2
    VOCAB = 50

    key = jax.random.PRNGKey(0)
    k_emb, k_seq, k_w = jax.random.split(key, 3)

    emb_table = jax.random.normal(k_emb, (VOCAB, H), jnp.float32) * 0.1
    input_seq = jax.random.randint(k_seq, (T, B), 0, VOCAB, jnp.int32)
    # pack_padded_sequence default requires sorted (descending) lengths, all >= 1
    input_lengths = jnp.array([8, 8, 7, 6, 5, 4, 3, 2], jnp.int32)

    # deterministic LSTM params (PyTorch-style uniform init), pre-transposed and
    # stacked over the two directions: wih (2, Hin, 4H), whh (2, H, 4H), b (2, 1, 4H)
    params = []
    bound = 1.0 / jnp.sqrt(jnp.float32(H))
    wkeys = jax.random.split(k_w, NUM_LAYERS * 2 * 4)
    ki = 0
    for layer in range(NUM_LAYERS):
        h_in = H if layer == 0 else 2 * H
        wih_list, whh_list, b_list = [], [], []
        for d in range(2):
            w_ih = jax.random.uniform(wkeys[ki + 0], (4 * H, h_in), jnp.float32,
                                      -bound, bound)
            w_hh = jax.random.uniform(wkeys[ki + 1], (4 * H, H), jnp.float32,
                                      -bound, bound)
            b_ih = jax.random.uniform(wkeys[ki + 2], (4 * H,), jnp.float32,
                                      -bound, bound)
            b_hh = jax.random.uniform(wkeys[ki + 3], (4 * H,), jnp.float32,
                                      -bound, bound)
            ki += 4
            wih_list.append(w_ih.T)
            whh_list.append(w_hh.T)
            b_list.append((b_ih + b_hh).reshape(1, 4 * H))
        params.append((jnp.stack(wih_list, 0),
                       jnp.stack(whh_list, 0),
                       jnp.stack(b_list, 0)))

    outputs, (h_n, c_n) = lstm_encoder_forward(
        input_seq, input_lengths, emb_table, params, H, NUM_LAYERS)
    jax.block_until_ready((outputs, h_n, c_n))

    ref_out, (ref_h, ref_c) = ref_encoder(
        input_seq, input_lengths, emb_table, params, H, NUM_LAYERS)

    assert outputs.shape == (T, B, H)
    assert h_n.shape == (NUM_LAYERS * 2, B, H)
    assert c_n.shape == (NUM_LAYERS * 2, B, H)
    assert jnp.allclose(outputs, ref_out, atol=2e-3, rtol=2e-3)
    assert jnp.allclose(h_n, ref_h, atol=2e-3, rtol=2e-3)
    assert jnp.allclose(c_n, ref_c, atol=2e-3, rtol=2e-3)

    print("KERNEL_OK")
</pallas_src>

<mosaic_0001>
module attributes {stable_mosaic.version = 11 : i64} {
  func.func @lstm_layer_kernel(%arg0: i32, %arg1: memref<1x64x32xf32, #tpu.memory_space<vmem>>, %arg2: memref<1x64x32xf32, #tpu.memory_space<vmem>>, %arg3: memref<1x32x128xf32, #tpu.memory_space<vmem>>, %arg4: memref<1x32x128xf32, #tpu.memory_space<vmem>>, %arg5: memref<1x1x128xf32, #tpu.memory_space<vmem>>, %arg6: memref<1x64x32xf32, #tpu.memory_space<vmem>>, %arg7: memref<1x8x32xf32, #tpu.memory_space<vmem>>, %arg8: memref<1x8x32xf32, #tpu.memory_space<vmem>>, %arg9: memref<64x128xf32, #tpu.memory_space<vmem>>) attributes {dimension_semantics = [#tpu.dimension_semantics<parallel>], iteration_bounds = array<i64: 2>, scalar_prefetch = 0 : i64, scratch_operands = 1 : i64, tpu.core_type = #tpu.core_type<tc>, window_params = [{transform_indices = @transform_0, window_bounds = array<i64: 1, 64, 32>}, {transform_indices = @transform_1, window_bounds = array<i64: 1, 64, 32>}, {transform_indices = @transform_2, window_bounds = array<i64: 1, 32, 128>}, {transform_indices = @transform_3, window_bounds = array<i64: 1, 32, 128>}, {transform_indices = @transform_4, window_bounds = array<i64: 1, 1, 128>}, {transform_indices = @transform_5, window_bounds = array<i64: 1, 64, 32>}, {transform_indices = @transform_6, window_bounds = array<i64: 1, 8, 32>}, {transform_indices = @transform_7, window_bounds = array<i64: 1, 8, 32>}]} {
    %c0 = arith.constant 0 : index
    %c0_0 = arith.constant 0 : index
    %c0_1 = arith.constant 0 : index
    %0 = vector.load %arg1[%c0, %c0_0, %c0_1] : memref<1x64x32xf32, #tpu.memory_space<vmem>>, vector<1x64x32xf32>
    %1 = vector.shape_cast %0 : vector<1x64x32xf32> to vector<64x32xf32>
    %c0_2 = arith.constant 0 : index
    %c0_3 = arith.constant 0 : index
    %c0_4 = arith.constant 0 : index
    %2 = vector.load %arg3[%c0_2, %c0_3, %c0_4] : memref<1x32x128xf32, #tpu.memory_space<vmem>>, vector<1x32x128xf32>
    %3 = vector.shape_cast %2 : vector<1x32x128xf32> to vector<32x128xf32>
    %cst = arith.constant dense<0.000000e+00> : vector<64x128xf32>
    %4 = tpu.matmul %1, %3, %cst {dimension_numbers = #tpu.dot_dimension_numbers<[1], [0], [0], [1], [0, 0, 1, 1], [], []>} : vector<64x32xf32>, vector<32x128xf32>, vector<64x128xf32> -> vector<64x128xf32>
    %c0_5 = arith.constant 0 : index
    %c0_6 = arith.constant 0 : index
    %c0_7 = arith.constant 0 : index
    %5 = vector.load %arg5[%c0_5, %c0_6, %c0_7] : memref<1x1x128xf32, #tpu.memory_space<vmem>>, vector<1x1x128xf32>
    %6 = vector.shape_cast %5 : vector<1x1x128xf32> to vector<1x128xf32>
    %7 = vector.broadcast %6 : vector<1x128xf32> to vector<64x128xf32>
    %8 = arith.addf %4, %7 : vector<64x128xf32>
    %c0_8 = arith.constant 0 : index
    %c0_9 = arith.constant 0 : index
    %9 = vector.load %arg9[%c0_8, %c0_9] : memref<64x128xf32, #tpu.memory_space<vmem>>, vector<64x128xf32>
    tpu.vector_store %arg9[%c0_8, %c0_9], %8 {strides = array<i32>} : memref<64x128xf32, #tpu.memory_space<vmem>>, vector<64x128xf32>,
    %c0_10 = arith.constant 0 : index
    %c0_11 = arith.constant 0 : index
    %c0_12 = arith.constant 0 : index
    %10 = vector.load %arg4[%c0_10, %c0_11, %c0_12] : memref<1x32x128xf32, #tpu.memory_space<vmem>>, vector<1x32x128xf32>
    %11 = vector.shape_cast %10 : vector<1x32x128xf32> to vector<32x128xf32>
    %cst_13 = arith.constant 0.000000e+00 : f32
    %12 = vector.broadcast %cst_13 : f32 to vector<8x32xf32>
    %cst_14 = arith.constant 0.000000e+00 : f32
    %13 = vector.broadcast %cst_14 : f32 to vector<8x32xf32>
    %c0_15 = arith.constant 0 : index
    %c0_16 = arith.constant 0 : index
    %14 = vector.load %arg9[%c0_15, %c0_16] : memref<64x128xf32, #tpu.memory_space<vmem>>, vector<8x128xf32>
    %cst_17 = arith.constant dense<0.000000e+00> : vector<8x128xf32>
    %15 = tpu.matmul %12, %11, %cst_17 {dimension_numbers = #tpu.dot_dimension_numbers<[1], [0], [0], [1], [0, 0, 1, 1], [], []>} : vector<8x32xf32>, vector<32x128xf32>, vector<8x128xf32> -> vector<8x128xf32>
    %16 = arith.addf %14, %15 : vector<8x128xf32>
    %17 = arith.negf %16 : vector<8x128xf32>
    %18 = math.exp %17 : vector<8x128xf32>
    %cst_18 = arith.constant 1.000000e+00 : f32
    %19 = vector.broadcast %cst_18 : f32 to vector<8x128xf32>
    %20 = arith.addf %19, %18 : vector<8x128xf32>
    %21 = arith.divf %19, %20 : vector<8x128xf32>
    %22 = math.tanh %16 : vector<8x128xf32>
    %23 = vector.extract_strided_slice %21 {offsets = [0, 0], sizes = [8, 32], strides = [1, 1]} : vector<8x128xf32> to vector<8x32xf32>
    %24 = vector.extract_strided_slice %21 {offsets = [0, 32], sizes = [8, 32], strides = [1, 1]} : vector<8x128xf32> to vector<8x32xf32>
    %25 = vector.extract_strided_slice %22 {offsets = [0, 64], sizes = [8, 32], strides = [1, 1]} : vector<8x128xf32> to vector<8x32xf32>
    %26 = vector.extract_strided_slice %21 {offsets = [0, 96], sizes = [8, 32], strides = [1, 1]} : vector<8x128xf32> to vector<8x32xf32>
    %27 = arith.mulf %24, %13 : vector<8x32xf32>
    %28 = arith.mulf %23, %25 : vector<8x32xf32>
    %29 = arith.addf %27, %28 : vector<8x32xf32>
    %30 = math.tanh %29 : vector<8x32xf32>
    %31 = arith.mulf %26, %30 : vector<8x32xf32>
    %c0_19 = arith.constant 0 : index
    %c0_20 = arith.constant 0 : index
    %c0_21 = arith.constant 0 : index
    %32 = vector.load %arg2[%c0_19, %c0_20, %c0_21] : memref<1x64x32xf32, #tpu.memory_space<vmem>>, vector<1x8x32xf32>
    %33 = vector.shape_cast %32 : vector<1x8x32xf32> to vector<8x32xf32>
    %34 = arith.subf %31, %12 : vector<8x32xf32>
    %35 = arith.mulf %33, %34 : vector<8x32xf32>
    %36 = arith.addf %12, %35 : vector<8x32xf32>
    %37 = arith.subf %29, %13 : vector<8x32xf32>
    %38 = arith.mulf %33, %37 : vector<8x32xf32>
    %39 = arith.addf %13, %38 : vector<8x32xf32>
    %40 = arith.mulf %33, %31 : vector<8x32xf32>
    %c0_22 = arith.constant 0 : index
    %c0_23 = arith.constant 0 : index
    %c0_24 = arith.constant 0 : index
    %41 = vector.load %arg6[%c0_22, %c0_23, %c0_24] : memref<1x64x32xf32, #tpu.memory_space<vmem>>, vector<1x8x32xf32>
    %42 = vector.shape_cast %41 : vector<1x8x32xf32> to vector<8x32xf32>
    %43 = vector.shape_cast %40 : vector<8x32xf32> to vector<1x8x32xf32>
    tpu.vector_store %arg6[%c0_22, %c0_23, %c0_24], %43 {strides = array<i32>} : memref<1x64x32xf32, #tpu.memory_space<vmem>>, vector<1x8x32xf32>,
    %c8 = arith.constant 8 : index
    %c0_25 = arith.constant 0 : index
    %44 = vector.load %arg9[%c8, %c0_25] : memref<64x128xf32, #tpu.memory_space<vmem>>, vector<8x128xf32>
    %cst_26 = arith.constant dense<0.000000e+00> : vector<8x128xf32>
    %45 = tpu.matmul %36, %11, %cst_26 {dimension_numbers = #tpu.dot_dimension_numbers<[1], [0], [0], [1], [0, 0, 1, 1], [], []>} : vector<8x32xf32>, vector<32x128xf32>, vector<8x128xf32> -> vector<8x128xf32>
    %46 = arith.addf %44, %45 : vector<8x128xf32>
    %47 = arith.negf %46 : vector<8x128xf32>
    %48 = math.exp %47 : vector<8x128xf32>
    %cst_27 = arith.constant 1.000000e+00 : f32
    %49 = vector.broadcast %cst_27 : f32 to vector<8x128xf32>
    %50 = arith.addf %49, %48 : vector<8x128xf32>
    %51 = arith.divf %49, %50 : vector<8x128xf32>
    %52 = math.tanh %46 : vector<8x128xf32>
    %53 = vector.extract_strided_slice %51 {offsets = [0, 0], sizes = [8, 32], strides = [1, 1]} : vector<8x128xf32> to vector<8x32xf32>
    %54 = vector.extract_strided_slice %51 {offsets = [0, 32], sizes = [8, 32], strides = [1, 1]} : vector<8x128xf32> to vector<8x32xf32>
    %55 = vector.extract_strided_slice %52 {offsets = [0, 64], sizes = [8, 32], strides = [1, 1]} : vector<8x128xf32> to vector<8x32xf32>
    %56 = vector.extract_strided_slice %51 {offsets = [0, 96], sizes = [8, 32], strides = [1, 1]} : vector<8x128xf32> to vector<8x32xf32>
    %57 = arith.mulf %54, %39 : vector<8x32xf32>
    %58 = arith.mulf %53, %55 : vector<8x32xf32>
    %59 = arith.addf %57, %58 : vector<8x32xf32>
    %60 = math.tanh %59 : vector<8x32xf32>
    %61 = arith.mulf %56, %60 : vector<8x32xf32>
    %c0_28 = arith.constant 0 : index
    %c8_29 = arith.constant 8 : index
    %c0_30 = arith.constant 0 : index
    %62 = vector.load %arg2[%c0_28, %c8_29, %c0_30] : memref<1x64x32xf32, #tpu.memory_space<vmem>>, vector<1x8x32xf32>
    %63 = vector.shape_cast %62 : vector<1x8x32xf32> to vector<8x32xf32>
    %64 = arith.subf %61, %36 : vector<8x32xf32>
    %65 = arith.mulf %63, %64 : vector<8x32xf32>
    %66 = arith.addf %36, %65 : vector<8x32xf32>
    %67 = arith.subf %59, %39 : vector<8x32xf32>
    %68 = arith.mulf %63, %67 : vector<8x32xf32>
    %69 = arith.addf %39, %68 : vector<8x32xf32>
    %70 = arith.mulf %63, %61 : vector<8x32xf32>
    %c0_31 = arith.constant 0 : index
    %c8_32 = arith.constant 8 : index
    %c0_33 = arith.constant 0 : index
    %71 = vector.load %arg6[%c0_31, %c8_32, %c0_33] : memref<1x64x32xf32, #tpu.memory_space<vmem>>, vector<1x8x32xf32>
    %72 = vector.shape_cast %71 : vector<1x8x32xf32> to vector<8x32xf32>
    %73 = vector.shape_cast %70 : vector<8x32xf32> to vector<1x8x32xf32>
    tpu.vector_store %arg6[%c0_31, %c8_32, %c0_33], %73 {strides = array<i32>} : memref<1x64x32xf32, #tpu.memory_space<vmem>>, vector<1x8x32xf32>,
    %c16 = arith.constant 16 : index
    %c0_34 = arith.constant 0 : index
    %74 = vector.load %arg9[%c16, %c0_34] : memref<64x128xf32, #tpu.memory_space<vmem>>, vector<8x128xf32>
    %cst_35 = arith.constant dense<0.000000e+00> : vector<8x128xf32>
    %75 = tpu.matmul %66, %11, %cst_35 {dimension_numbers = #tpu.dot_dimension_numbers<[1], [0], [0], [1], [0, 0, 1, 1], [], []>} : vector<8x32xf32>, vector<32x128xf32>, vector<8x128xf32> -> vector<8x128xf32>
    %76 = arith.addf %74, %75 : vector<8x128xf32>
    %77 = arith.negf %76 : vector<8x128xf32>
    %78 = math.exp %77 : vector<8x128xf32>
    %cst_36 = arith.constant 1.000000e+00 : f32
    %79 = vector.broadcast %cst_36 : f32 to vector<8x128xf32>
    %80 = arith.addf %79, %78 : vector<8x128xf32>
    %81 = arith.divf %79, %80 : vector<8x128xf32>
    %82 = math.tanh %76 : vector<8x128xf32>
    %83 = vector.extract_strided_slice %81 {offsets = [0, 0], sizes = [8, 32], strides = [1, 1]} : vector<8x128xf32> to vector<8x32xf32>
    %84 = vector.extract_strided_slice %81 {offsets = [0, 32], sizes = [8, 32], strides = [1, 1]} : vector<8x128xf32> to vector<8x32xf32>
    %85 = vector.extract_strided_slice %82 {offsets = [0, 64], sizes = [8, 32], strides = [1, 1]} : vector<8x128xf32> to vector<8x32xf32>
    %86 = vector.extract_strided_slice %81 {offsets = [0, 96], sizes = [8, 32], strides = [1, 1]} : vector<8x128xf32> to vector<8x32xf32>
    %87 = arith.mulf %84, %69 : vector<8x32xf32>
    %88 = arith.mulf %83, %85 : vector<8x32xf32>
    %89 = arith.addf %87, %88 : vector<8x32xf32>
    %90 = math.tanh %89 : vector<8x32xf32>
    %91 = arith.mulf %86, %90 : vector<8x32xf32>
    %c0_37 = arith.constant 0 : index
    %c16_38 = arith.constant 16 : index
    %c0_39 = arith.constant 0 : index
    %92 = vector.load %arg2[%c0_37, %c16_38, %c0_39] : memref<1x64x32xf32, #tpu.memory_space<vmem>>, vector<1x8x32xf32>
    %93 = vector.shape_cast %92 : vector<1x8x32xf32> to vector<8x32xf32>
    %94 = arith.subf %91, %66 : vector<8x32xf32>
    %95 = arith.mulf %93, %94 : vector<8x32xf32>
    %96 = arith.addf %66, %95 : vector<8x32xf32>
    %97 = arith.subf %89, %69 : vector<8x32xf32>
    %98 = arith.mulf %93, %97 : vector<8x32xf32>
    %99 = arith.addf %69, %98 : vector<8x32xf32>
    %100 = arith.mulf %93, %91 : vector<8x32xf32>
    %c0_40 = arith.constant 0 : index
    %c16_41 = arith.constant 16 : index
    %c0_42 = arith.constant 0 : index
    %101 = vector.load %arg6[%c0_40, %c16_41, %c0_42] : memref<1x64x32xf32, #tpu.memory_space<vmem>>, vector<1x8x32xf32>
    %102 = vector.shape_cast %101 : vector<1x8x32xf32> to vector<8x32xf32>
    %103 = vector.shape_cast %100 : vector<8x32xf32> to vector<1x8x32xf32>
    tpu.vector_store %arg6[%c0_40, %c16_41, %c0_42], %103 {strides = array<i32>} : memref<1x64x32xf32, #tpu.memory_space<vmem>>, vector<1x8x32xf32>,
    %c24 = arith.constant 24 : index
    %c0_43 = arith.constant 0 : index
    %104 = vector.load %arg9[%c24, %c0_43] : memref<64x128xf32, #tpu.memory_space<vmem>>, vector<8x128xf32>
    %cst_44 = arith.constant dense<0.000000e+00> : vector<8x128xf32>
    %105 = tpu.matmul %96, %11, %cst_44 {dimension_numbers = #tpu.dot_dimension_numbers<[1], [0], [0], [1], [0, 0, 1, 1], [], []>} : vector<8x32xf32>, vector<32x128xf32>, vector<8x128xf32> -> vector<8x128xf32>
    %106 = arith.addf %104, %105 : vector<8x128xf32>
    %107 = arith.negf %106 : vector<8x128xf32>
    %108 = math.exp %107 : vector<8x128xf32>
    %cst_45 = arith.constant 1.000000e+00 : f32
    %109 = vector.broadcast %cst_45 : f32 to vector<8x128xf32>
    %110 = arith.addf %109, %108 : vector<8x128xf32>
    %111 = arith.divf %109, %110 : vector<8x128xf32>
    %112 = math.tanh %106 : vector<8x128xf32>
    %113 = vector.extract_strided_slice %111 {offsets = [0, 0], sizes = [8, 32], strides = [1, 1]} : vector<8x128xf32> to vector<8x32xf32>
    %114 = vector.extract_strided_slice %111 {offsets = [0, 32], sizes = [8, 32], strides = [1, 1]} : vector<8x128xf32> to vector<8x32xf32>
    %115 = vector.extract_strided_slice %112 {offsets = [0, 64], sizes = [8, 32], strides = [1, 1]} : vector<8x128xf32> to vector<8x32xf32>
    %116 = vector.extract_strided_slice %111 {offsets = [0, 96], sizes = [8, 32], strides = [1, 1]} : vector<8x128xf32> to vector<8x32xf32>
    %117 = arith.mulf %114, %99 : vector<8x32xf32>
    %118 = arith.mulf %113, %115 : vector<8x32xf32>
    %119 = arith.addf %117, %118 : vector<8x32xf32>
    %120 = math.tanh %119 : vector<8x32xf32>
    %121 = arith.mulf %116, %120 : vector<8x32xf32>
    %c0_46 = arith.constant 0 : index
    %c24_47 = arith.constant 24 : index
    %c0_48 = arith.constant 0 : index
    %122 = vector.load %arg2[%c0_46, %c24_47, %c0_48] : memref<1x64x32xf32, #tpu.memory_space<vmem>>, vector<1x8x32xf32>
    %123 = vector.shape_cast %122 : vector<1x8x32xf32> to vector<8x32xf32>
    %124 = arith.subf %121, %96 : vector<8x32xf32>
    %125 = arith.mulf %123, %124 : vector<8x32xf32>
    %126 = arith.addf %96, %125 : vector<8x32xf32>
    %127 = arith.subf %119, %99 : vector<8x32xf32>
    %128 = arith.mulf %123, %127 : vector<8x32xf32>
    %129 = arith.addf %99, %128 : vector<8x32xf32>
    %130 = arith.mulf %123, %121 : vector<8x32xf32>
    %c0_49 = arith.constant 0 : index
    %c24_50 = arith.constant 24 : index
    %c0_51 = arith.constant 0 : index
    %131 = vector.load %arg6[%c0_49, %c24_50, %c0_51] : memref<1x64x32xf32, #tpu.memory_space<vmem>>, vector<1x8x32xf32>
    %132 = vector.shape_cast %131 : vector<1x8x32xf32> to vector<8x32xf32>
    %133 = vector.shape_cast %130 : vector<8x32xf32> to vector<1x8x32xf32>
    tpu.vector_store %arg6[%c0_49, %c24_50, %c0_51], %133 {strides = array<i32>} : memref<1x64x32xf32, #tpu.memory_space<vmem>>, vector<1x8x32xf32>,
    %c32 = arith.constant 32 : index
    %c0_52 = arith.constant 0 : index
    %134 = vector.load %arg9[%c32, %c0_52] : memref<64x128xf32, #tpu.memory_space<vmem>>, vector<8x128xf32>
    %cst_53 = arith.constant dense<0.000000e+00> : vector<8x128xf32>
    %135 = tpu.matmul %126, %11, %cst_53 {dimension_numbers = #tpu.dot_dimension_numbers<[1], [0], [0], [1], [0, 0, 1, 1], [], []>} : vector<8x32xf32>, vector<32x128xf32>, vector<8x128xf32> -> vector<8x128xf32>
    %136 = arith.addf %134, %135 : vector<8x128xf32>
    %137 = arith.negf %136 : vector<8x128xf32>
    %138 = math.exp %137 : vector<8x128xf32>
    %cst_54 = arith.constant 1.000000e+00 : f32
    %139 = vector.broadcast %cst_54 : f32 to vector<8x128xf32>
    %140 = arith.addf %139, %138 : vector<8x128xf32>
    %141 = arith.divf %139, %140 : vector<8x128xf32>
    %142 = math.tanh %136 : vector<8x128xf32>
    %143 = vector.extract_strided_slice %141 {offsets = [0, 0], sizes = [8, 32], strides = [1, 1]} : vector<8x128xf32> to vector<8x32xf32>
    %144 = vector.extract_strided_slice %141 {offsets = [0, 32], sizes = [8, 32], strides = [1, 1]} : vector<8x128xf32> to vector<8x32xf32>
    %145 = vector.extract_strided_slice %142 {offsets = [0, 64], sizes = [8, 32], strides = [1, 1]} : vector<8x128xf32> to vector<8x32xf32>
    %146 = vector.extract_strided_slice %141 {offsets = [0, 96], sizes = [8, 32], strides = [1, 1]} : vector<8x128xf32> to vector<8x32xf32>
    %147 = arith.mulf %144, %129 : vector<8x32xf32>
    %148 = arith.mulf %143, %145 : vector<8x32xf32>
    %149 = arith.addf %147, %148 : vector<8x32xf32>
    %150 = math.tanh %149 : vector<8x32xf32>
    %151 = arith.mulf %146, %150 : vector<8x32xf32>
    %c0_55 = arith.constant 0 : index
    %c32_56 = arith.constant 32 : index
    %c0_57 = arith.constant 0 : index
    %152 = vector.load %arg2[%c0_55, %c32_56, %c0_57] : memref<1x64x32xf32, #tpu.memory_space<vmem>>, vector<1x8x32xf32>
    %153 = vector.shape_cast %152 : vector<1x8x32xf32> to vector<8x32xf32>
    %154 = arith.subf %151, %126 : vector<8x32xf32>
    %155 = arith.mulf %153, %154 : vector<8x32xf32>
    %156 = arith.addf %126, %155 : vector<8x32xf32>
    %157 = arith.subf %149, %129 : vector<8x32xf32>
    %158 = arith.mulf %153, %157 : vector<8x32xf32>
    %159 = arith.addf %129, %158 : vector<8x32xf32>
    %160 = arith.mulf %153, %151 : vector<8x32xf32>
    %c0_58 = arith.constant 0 : index
    %c32_59 = arith.constant 32 : index
    %c0_60 = arith.constant 0 : index
    %161 = vector.load %arg6[%c0_58, %c32_59, %c0_60] : memref<1x64x32xf32, #tpu.memory_space<vmem>>, vector<1x8x32xf32>
    %162 = vector.shape_cast %161 : vector<1x8x32xf32> to vector<8x32xf32>
    %163 = vector.shape_cast %160 : vector<8x32xf32> to vector<1x8x32xf32>
    tpu.vector_store %arg6[%c0_58, %c32_59, %c0_60], %163 {strides = array<i32>} : memref<1x64x32xf32, #tpu.memory_space<vmem>>, vector<1x8x32xf32>,
    %c40 = arith.constant 40 : index
    %c0_61 = arith.constant 0 : index
    %164 = vector.load %arg9[%c40, %c0_61] : memref<64x128xf32, #tpu.memory_space<vmem>>, vector<8x128xf32>
    %cst_62 = arith.constant dense<0.000000e+00> : vector<8x128xf32>
    %165 = tpu.matmul %156, %11, %cst_62 {dimension_numbers = #tpu.dot_dimension_numbers<[1], [0], [0], [1], [0, 0, 1, 1], [], []>} : vector<8x32xf32>, vector<32x128xf32>, vector<8x128xf32> -> vector<8x128xf32>
    %166 = arith.addf %164, %165 : vector<8x128xf32>
    %167 = arith.negf %166 : vector<8x128xf32>
    %168 = math.exp %167 : vector<8x128xf32>
    %cst_63 = arith.constant 1.000000e+00 : f32
    %169 = vector.broadcast %cst_63 : f32 to vector<8x128xf32>
    %170 = arith.addf %169, %168 : vector<8x128xf32>
    %171 = arith.divf %169, %170 : vector<8x128xf32>
    %172 = math.tanh %166 : vector<8x128xf32>
    %173 = vector.extract_strided_slice %171 {offsets = [0, 0], sizes = [8, 32], strides = [1, 1]} : vector<8x128xf32> to vector<8x32xf32>
    %174 = vector.extract_strided_slice %171 {offsets = [0, 32], sizes = [8, 32], strides = [1, 1]} : vector<8x128xf32> to vector<8x32xf32>
    %175 = vector.extract_strided_slice %172 {offsets = [0, 64], sizes = [8, 32], strides = [1, 1]} : vector<8x128xf32> to vector<8x32xf32>
    %176 = vector.extract_strided_slice %171 {offsets = [0, 96], sizes = [8, 32], strides = [1, 1]} : vector<8x128xf32> to vector<8x32xf32>
    %177 = arith.mulf %174, %159 : vector<8x32xf32>
    %178 = arith.mulf %173, %175 : vector<8x32xf32>
    %179 = arith.addf %177, %178 : vector<8x32xf32>
    %180 = math.tanh %179 : vector<8x32xf32>
    %181 = arith.mulf %176, %180 : vector<8x32xf32>
    %c0_64 = arith.constant 0 : index
    %c40_65 = arith.constant 40 : index
    %c0_66 = arith.constant 0 : index
    %182 = vector.load %arg2[%c0_64, %c40_65, %c0_66] : memref<1x64x32xf32, #tpu.memory_space<vmem>>, vector<1x8x32xf32>
    %183 = vector.shape_cast %182 : vector<1x8x32xf32> to vector<8x32xf32>
    %184 = arith.subf %181, %156 : vector<8x32xf32>
    %185 = arith.mulf %183, %184 : vector<8x32xf32>
    %186 = arith.addf %156, %185 : vector<8x32xf32>
    %187 = arith.subf %179, %159 : vector<8x32xf32>
    %188 = arith.mulf %183, %187 : vector<8x32xf32>
    %189 = arith.addf %159, %188 : vector<8x32xf32>
    %190 = arith.mulf %183, %181 : vector<8x32xf32>
    %c0_67 = arith.constant 0 : index
    %c40_68 = arith.constant 40 : index
    %c0_69 = arith.constant 0 : index
    %191 = vector.load %arg6[%c0_67, %c40_68, %c0_69] : memref<1x64x32xf32, #tpu.memory_space<vmem>>, vector<1x8x32xf32>
    %192 = vector.shape_cast %191 : vector<1x8x32xf32> to vector<8x32xf32>
    %193 = vector.shape_cast %190 : vector<8x32xf32> to vector<1x8x32xf32>
    tpu.vector_store %arg6[%c0_67, %c40_68, %c0_69], %193 {strides = array<i32>} : memref<1x64x32xf32, #tpu.memory_space<vmem>>, vector<1x8x32xf32>,
    %c48 = arith.constant 48 : index
    %c0_70 = arith.constant 0 : index
    %194 = vector.load %arg9[%c48, %c0_70] : memref<64x128xf32, #tpu.memory_space<vmem>>, vector<8x128xf32>
    %cst_71 = arith.constant dense<0.000000e+00> : vector<8x128xf32>
    %195 = tpu.matmul %186, %11, %cst_71 {dimension_numbers = #tpu.dot_dimension_numbers<[1], [0], [0], [1], [0, 0, 1, 1], [], []>} : vector<8x32xf32>, vector<32x128xf32>, vector<8x128xf32> -> vector<8x128xf32>
    %196 = arith.addf %194, %195 : vector<8x128xf32>
    %197 = arith.negf %196 : vector<8x128xf32>
    %198 = math.exp %197 : vector<8x128xf32>
    %cst_72 = arith.constant 1.000000e+00 : f32
    %199 = vector.broadcast %cst_72 : f32 to vector<8x128xf32>
    %200 = arith.addf %199, %198 : vector<8x128xf32>
    %201 = arith.divf %199, %200 : vector<8x128xf32>
    %202 = math.tanh %196 : vector<8x128xf32>
    %203 = vector.extract_strided_slice %201 {offsets = [0, 0], sizes = [8, 32], strides = [1, 1]} : vector<8x128xf32> to vector<8x32xf32>
    %204 = vector.extract_strided_slice %201 {offsets = [0, 32], sizes = [8, 32], strides = [1, 1]} : vector<8x128xf32> to vector<8x32xf32>
    %205 = vector.extract_strided_slice %202 {offsets = [0, 64], sizes = [8, 32], strides = [1, 1]} : vector<8x128xf32> to vector<8x32xf32>
    %206 = vector.extract_strided_slice %201 {offsets = [0, 96], sizes = [8, 32], strides = [1, 1]} : vector<8x128xf32> to vector<8x32xf32>
    %207 = arith.mulf %204, %189 : vector<8x32xf32>
    %208 = arith.mulf %203, %205 : vector<8x32xf32>
    %209 = arith.addf %207, %208 : vector<8x32xf32>
    %210 = math.tanh %209 : vector<8x32xf32>
    %211 = arith.mulf %206, %210 : vector<8x32xf32>
    %c0_73 = arith.constant 0 : index
    %c48_74 = arith.constant 48 : index
    %c0_75 = arith.constant 0 : index
    %212 = vector.load %arg2[%c0_73, %c48_74, %c0_75] : memref<1x64x32xf32, #tpu.memory_space<vmem>>, vector<1x8x32xf32>
    %213 = vector.shape_cast %212 : vector<1x8x32xf32> to vector<8x32xf32>
    %214 = arith.subf %211, %186 : vector<8x32xf32>
    %215 = arith.mulf %213, %214 : vector<8x32xf32>
    %216 = arith.addf %186, %215 : vector<8x32xf32>
    %217 = arith.subf %209, %189 : vector<8x32xf32>
    %218 = arith.mulf %213, %217 : vector<8x32xf32>
    %219 = arith.addf %189, %218 : vector<8x32xf32>
    %220 = arith.mulf %213, %211 : vector<8x32xf32>
    %c0_76 = arith.constant 0 : index
    %c48_77 = arith.constant 48 : index
    %c0_78 = arith.constant 0 : index
    %221 = vector.load %arg6[%c0_76, %c48_77, %c0_78] : memref<1x64x32xf32, #tpu.memory_space<vmem>>, vector<1x8x32xf32>
    %222 = vector.shape_cast %221 : vector<1x8x32xf32> to vector<8x32xf32>
    %223 = vector.shape_cast %220 : vector<8x32xf32> to vector<1x8x32xf32>
    tpu.vector_store %arg6[%c0_76, %c48_77, %c0_78], %223 {strides = array<i32>} : memref<1x64x32xf32, #tpu.memory_space<vmem>>, vector<1x8x32xf32>,
    %c56 = arith.constant 56 : index
    %c0_79 = arith.constant 0 : index
    %224 = vector.load %arg9[%c56, %c0_79] : memref<64x128xf32, #tpu.memory_space<vmem>>, vector<8x128xf32>
    %cst_80 = arith.constant dense<0.000000e+00> : vector<8x128xf32>
    %225 = tpu.matmul %216, %11, %cst_80 {dimension_numbers = #tpu.dot_dimension_numbers<[1], [0], [0], [1], [0, 0, 1, 1], [], []>} : vector<8x32xf32>, vector<32x128xf32>, vector<8x128xf32> -> vector<8x128xf32>
    %226 = arith.addf %224, %225 : vector<8x128xf32>
    %227 = arith.negf %226 : vector<8x128xf32>
    %228 = math.exp %227 : vector<8x128xf32>
    %cst_81 = arith.constant 1.000000e+00 : f32
    %229 = vector.broadcast %cst_81 : f32 to vector<8x128xf32>
    %230 = arith.addf %229, %228 : vector<8x128xf32>
    %231 = arith.divf %229, %230 : vector<8x128xf32>
    %232 = math.tanh %226 : vector<8x128xf32>
    %233 = vector.extract_strided_slice %231 {offsets = [0, 0], sizes = [8, 32], strides = [1, 1]} : vector<8x128xf32> to vector<8x32xf32>
    %234 = vector.extract_strided_slice %231 {offsets = [0, 32], sizes = [8, 32], strides = [1, 1]} : vector<8x128xf32> to vector<8x32xf32>
    %235 = vector.extract_strided_slice %232 {offsets = [0, 64], sizes = [8, 32], strides = [1, 1]} : vector<8x128xf32> to vector<8x32xf32>
    %236 = vector.extract_strided_slice %231 {offsets = [0, 96], sizes = [8, 32], strides = [1, 1]} : vector<8x128xf32> to vector<8x32xf32>
    %237 = arith.mulf %234, %219 : vector<8x32xf32>
    %238 = arith.mulf %233, %235 : vector<8x32xf32>
    %239 = arith.addf %237, %238 : vector<8x32xf32>
    %240 = math.tanh %239 : vector<8x32xf32>
    %241 = arith.mulf %236, %240 : vector<8x32xf32>
    %c0_82 = arith.constant 0 : index
    %c56_83 = arith.constant 56 : index
    %c0_84 = arith.constant 0 : index
    %242 = vector.load %arg2[%c0_82, %c56_83, %c0_84] : memref<1x64x32xf32, #tpu.memory_space<vmem>>, vector<1x8x32xf32>
    %243 = vector.shape_cast %242 : vector<1x8x32xf32> to vector<8x32xf32>
    %244 = arith.subf %241, %216 : vector<8x32xf32>
    %245 = arith.mulf %243, %244 : vector<8x32xf32>
    %246 = arith.addf %216, %245 : vector<8x32xf32>
    %247 = arith.subf %239, %219 : vector<8x32xf32>
    %248 = arith.mulf %243, %247 : vector<8x32xf32>
    %249 = arith.addf %219, %248 : vector<8x32xf32>
    %250 = arith.mulf %243, %241 : vector<8x32xf32>
    %c0_85 = arith.constant 0 : index
    %c56_86 = arith.constant 56 : index
    %c0_87 = arith.constant 0 : index
    %251 = vector.load %arg6[%c0_85, %c56_86, %c0_87] : memref<1x64x32xf32, #tpu.memory_space<vmem>>, vector<1x8x32xf32>
    %252 = vector.shape_cast %251 : vector<1x8x32xf32> to vector<8x32xf32>
    %253 = vector.shape_cast %250 : vector<8x32xf32> to vector<1x8x32xf32>
    tpu.vector_store %arg6[%c0_85, %c56_86, %c0_87], %253 {strides = array<i32>} : memref<1x64x32xf32, #tpu.memory_space<vmem>>, vector<1x8x32xf32>,
    %c0_88 = arith.constant 0 : index
    %c0_89 = arith.constant 0 : index
    %c0_90 = arith.constant 0 : index
    %254 = vector.load %arg7[%c0_88, %c0_89, %c0_90] : memref<1x8x32xf32, #tpu.memory_space<vmem>>, vector<1x8x32xf32>
    %255 = vector.shape_cast %254 : vector<1x8x32xf32> to vector<8x32xf32>
    %256 = vector.shape_cast %246 : vector<8x32xf32> to vector<1x8x32xf32>
    tpu.vector_store %arg7[%c0_88, %c0_89, %c0_90], %256 {strides = array<i32>} : memref<1x8x32xf32, #tpu.memory_space<vmem>>, vector<1x8x32xf32>,
    %c0_91 = arith.constant 0 : index
    %c0_92 = arith.constant 0 : index
    %c0_93 = arith.constant 0 : index
    %257 = vector.load %arg8[%c0_91, %c0_92, %c0_93] : memref<1x8x32xf32, #tpu.memory_space<vmem>>, vector<1x8x32xf32>
    %258 = vector.shape_cast %257 : vector<1x8x32xf32> to vector<8x32xf32>
    %259 = vector.shape_cast %249 : vector<8x32xf32> to vector<1x8x32xf32>
    tpu.vector_store %arg8[%c0_91, %c0_92, %c0_93], %259 {strides = array<i32>} : memref<1x8x32xf32, #tpu.memory_space<vmem>>, vector<1x8x32xf32>,
    return
  }
  func.func @transform_0(%arg0: i32) -> (i32, i32, i32) {
    %c0_i32 = arith.constant 0 : i32
    %c0_i32_0 = arith.constant 0 : i32
    %c0_i32_1 = arith.constant 0 : i32
    return %arg0, %c0_i32, %c0_i32_0 : i32, i32, i32
  }
  func.func @transform_1(%arg0: i32) -> (i32, i32, i32) {
    %c0_i32 = arith.constant 0 : i32
    %c0_i32_0 = arith.constant 0 : i32
    %c0_i32_1 = arith.constant 0 : i32
    return %arg0, %c0_i32, %c0_i32_0 : i32, i32, i32
  }
  func.func @transform_2(%arg0: i32) -> (i32, i32, i32) {
    %c0_i32 = arith.constant 0 : i32
    %c0_i32_0 = arith.constant 0 : i32
    %c0_i32_1 = arith.constant 0 : i32
    return %arg0, %c0_i32, %c0_i32_0 : i32, i32, i32
  }
  func.func @transform_3(%arg0: i32) -> (i32, i32, i32) {
    %c0_i32 = arith.constant 0 : i32
    %c0_i32_0 = arith.constant 0 : i32
    %c0_i32_1 = arith.constant 0 : i32
    return %arg0, %c0_i32, %c0_i32_0 : i32, i32, i32
  }
  func.func @transform_4(%arg0: i32) -> (i32, i32, i32) {
    %c0_i32 = arith.constant 0 : i32
    %c0_i32_0 = arith.constant 0 : i32
    %c0_i32_1 = arith.constant 0 : i32
    return %arg0, %c0_i32, %c0_i32_0 : i32, i32, i32
  }
  func.func @transform_5(%arg0: i32) -> (i32, i32, i32) {
    %c0_i32 = arith.constant 0 : i32
    %c0_i32_0 = arith.constant 0 : i32
    %c0_i32_1 = arith.constant 0 : i32
    return %arg0, %c0_i32, %c0_i32_0 : i32, i32, i32
  }
  func.func @transform_6(%arg0: i32) -> (i32, i32, i32) {
    %c0_i32 = arith.constant 0 : i32
    %c0_i32_0 = arith.constant 0 : i32
    %c0_i32_1 = arith.constant 0 : i32
    return %arg0, %c0_i32, %c0_i32_0 : i32, i32, i32
  }
  func.func @transform_7(%arg0: i32) -> (i32, i32, i32) {
    %c0_i32 = arith.constant 0 : i32
    %c0_i32_0 = arith.constant 0 : i32
    %c0_i32_1 = arith.constant 0 : i32
    return %arg0, %c0_i32, %c0_i32_0 : i32, i32, i32
  }
}

</mosaic_0001>

<bundles_post_ra>
// kernel: tpu_custom_call.1
= control target key start
LH: loop header
LB: loop body
LE: loop exit
PB: predicated region body
PF: predicated region fallthrough
CT: control target
= control target key end

     0   :  { %13 = vsyncpa [#allocation4], 0  ;;  %s2654_s0 = inlined_call_operand.vmem [shape: f32[2,64,32], index: 0, kind: input, shape index: {}]   ;;  %s2655_s1 = inlined_call_operand.vmem [shape: f32[2,64,32], index: 1, kind: input, shape index: {}]   ;;  %s2656_s2 = inlined_call_operand.vmem [shape: f32[2,32,128], index: 2, kind: input, shape index: {}]   ;;  %s2657_s3 = inlined_call_operand.vmem [shape: f32[2,32,128], index: 3, kind: input, shape index: {}]   ;;  %s2658_s4 = inlined_call_operand.vmem [shape: f32[2,1,128], index: 4, kind: input, shape index: {}]   ;;  %s2659_s5 = inlined_call_operand.vmem [shape: f32[2,64,32], index: 5, kind: output, shape index: {0}]   ;;  %s2660_s6 = inlined_call_operand.hbm [shape: f32[2,8,32], index: 6, kind: output, shape index: {1}]   ;;  %s2661_s7 = inlined_call_operand.hbm [shape: f32[2,8,32], index: 7, kind: output, shape index: {2}]  }
   0x1   :  { %15 = vsyncpa [#allocation4 + $0x1], 0 }
   0x2   :  { %16 = vsyncpa [#allocation6], 0 }
   0x3   :  { %18 = vsyncpa [#allocation6 + $0x1], 0  ;;  %s2203_s24 = smov 0   ;;  %s2205_s25 = smov 0  }
   0x4   :  { %s2207_s26 = smov 0   ;;  %s2209_s27 = smov 0  }
   0x5 LB: > { %s2224_s28 = sadd.s32 4294967295, %s2154_s27   ;;  %s1740_s29 = sadd.s32 4294967294, %s2154_s27   ;;  %s2154_s27 = sphi %s2209_s27, %s2674_s27   ;;  %s2150_s26 = sphi %s2207_s26, %s2673_s26   ;;  %s2146_s25 = sphi %s2205_s25, %s2672_s25   ;;  %s2142_s24 = sphi %s2203_s24, %s2671_s24  }
   0x6   : > { %s2228_s30 = sadd.s32 1, %s2154_s27   ;;  %s187_s8 = sadd.s32 1, %s2150_s26 }
   0x7   : > { %s184_s9 = ssub.s32 %s2154_s27, %s2228_s30  ;;  %p197_p0 = scmp.ne.s32.totalorder %s2150_s26, %s2146_s25 }
   0x8   : > { %p185_p1 = scmp.eq.s32.totalorder %s184_s9, 0  ;;  %p198_p2 = scmp.eq.s32.totalorder %s2224_s28, 1 }
   0x9   : > { %p203_p3 = scmp.ne.s32.totalorder %s2146_s25, %s2142_s24  ;;  %p204_p4 = scmp.eq.s32.totalorder %s1740_s29, 1 }
   0xa   : > { %s2239_s10 = scalar_select %p185_p1, %s2150_s26, %s187_s8  }
   0xb   : > { %p2241_p5 = por %p198_p2, %p197_p0  ;;  %p2245_p6 = por %p204_p4, %p203_p3 }
   0xc   : > { %p1743_p7 = scmp.ge.s32.totalorder %s2154_s27, 1  ;;  %p286_p8 = scmp.lt.s32.totalorder %s2154_s27, 3 }
   0xe   : > { %p287_p9 = pnand %p1743_p7, %p286_p8 }
   0xf   : > { %p346_p10 = scmp.lt.s32.totalorder (!%p287_p9), %s2224_s28, 1  ;;  %s2158_s16 = smov (!%p287_p9), 64  }
  0x10   : > { %290 = sbr.rel (%p287_p9) target bundleno = 5617 (0x15f1), region = 40  ;;  %s2160_s17 = smov (!%p287_p9), 96  }
  0x11   : > { %s2663_s9 = sshll.u32 (!%p287_p9), %s2224_s28, 7 }
  0x15   : > { %v2156_v0 = vmov 0.0   ;;  %vm2157_vm0 = vmmov 0   ;;  %s2256_s13 = scalar_select %p346_p10, %s2224_s28, 1  ;;  %vm393_vm1 = vcmask 261120  }
  0x16   : > { %1863 = vmatprep.subr.mxu1 %v2156_v0  ;;  %1871 = vmatprep.mubr.msk.f32.mxu1 %vm2157_vm0, %v2156_v0 }
  0x17   : > { %s2259_s14 = sshll.u32 %s2256_s13, 6  ;;  %s1788_s15 = sshll.u32 %s2256_s13, 5 }
  0x18   : > { %s360_s18 = scalar_lea.vmem %s2656_s2, %s1788_s15  ;;  %s365_s21 = scalar_lea.vmem %s2657_s3, %s1788_s15 }
  0x19   : > { %v385_v1 = vld [vmem:[%s360_s18 + $0x18] sm:$0xff]  ;;  %v384_v2 = vld [vmem:[%s360_s18 + $0x10] sm:$0xff]  ;;  %s2272_s29 = scalar_lea.vmem %s2654_s0, %s2259_s14  ;;  %v383_v5 = vld [vmem:[%s360_s18 + $0x8] sm:$0xff]  ;;  %s368_s15 = scalar_lea.vmem %s2658_s4, %s2256_s13 }
  0x1a   : > { %1843 = vmatprep.subr.mxu0 %v385_v1  ;;  %v2274_v3 = vld [vmem:[%s365_s21 + $0x10] sm:$0xff]  ;;  %v2276_v4 = vld [vmem:[%s365_s21 + $0x18] sm:$0xff]  ;;  %v382_v6 = vld [vmem:[%s360_s18] sm:$0xff]  ;;  %s2664_s13 = smov 32   ;;  %s2329_s20 = scalar_lea.vmem %s2655_s1, %s2259_s14 }
  0x1b   : > { %1844 = vmatpush3.msra.mxu0 %v385_v1  ;;  %1864 = vmatpush3.msra.mxu1 %v2276_v4  ;;  %v374_v7 = vld [vmem:[%s2272_s29] sm:$0xff]  ;;  %v2281_v8 = vld [vmem:[%s365_s21 + $0x8] sm:$0xff]  ;;  %s2338_s23 = scalar_lea.vmem %s2659_s5, %s2259_s14  ;;  %v376_v53 = vld [vmem:[%s2272_s29 + $0x10] sm:$0xff]  ;;  %s2544_s14 = sand.u32 1, %s2146_s25  }
  0x1c   : > { %1845 = vmatprep.subr.mxu0 %v384_v2  ;;  %1865 = vmatprep.subr.mxu1 %v2156_v0  ;;  %v375_v9 = vld [vmem:[%s2272_s29 + $0x8] sm:$0xff]  ;;  %v2286_v10 = vld [vmem:[%s365_s21] sm:$0xff]  ;;  %v377_v54 = vld [vmem:[%s2272_s29 + $0x18] sm:$0xff]  ;;  %s1550_s19 = scalar_lea.sflag [#allocation6], %s2544_s14  ;;  %s2161_s21 = smov [#allocation5]  }
  0x1d   : > { %1846 = vmatpush3.msra.mxu0 %v384_v2  ;;  %1866 = vmatpush3.msra.mxu1 %v2274_v3  ;;  %v2318_v12 = vld [vmem:[%s368_s15] ss:$0 sm:$0xff]  ;;  %v379_v56 = vld [vmem:[%s2272_s29 + $0x28] sm:$0xff]  ;;  %v380_v57 = vld [vmem:[%s2272_s29 + $0x30] sm:$0xff]  ;;  %s2068_s22 = sshll.u32 %s2161_s21, 4  ;;  %s2069_s22 = int_to_ptr.vmem [resolvable:$false] %s2068_s22 }
  0x1e   : > { %1847 = vmatprep.subr.mxu0 %v383_v5  ;;  %1867 = vmatprep.subr.mxu1 %v2156_v0  ;;  %v634_v29 = vld [vmem:[%s2329_s20] sm:$0xff]  ;;  %v2374_v59 = vld [vmem:[%s2329_s20 + $0x8] sm:$0xff]  ;;  %v381_v60 = vld [vmem:[%s2272_s29 + $0x38] sm:$0xff] }
  0x1f   : > { %1848 = vmatpush3.msra.mxu0 %v383_v5  ;;  %1851 = vmatprep.mubr.msk.f32.mxu0 %vm393_vm1, %v374_v7  ;;  %v378_v55 = vld [vmem:[%s2272_s29 + $0x20] sm:$0xff]  ;;  %s2662_s29 = sshll.u32 %s2544_s14, 3 }
  0x20   : > { %1849 = vmatprep.subr.mxu0 %v382_v6  ;;  %1868 = vmatpush3.msra.mxu1 %v2281_v8  ;;  %s345_s8 = scalar_lea.vmem [#allocation5], %s2662_s29  ;;  %s2070_s29 = scalar_lea.vmem %s2069_s22, 256 }
  0x21   : > { %1850 = vmatpush3.msra.mxu0 %v382_v6  ;;  %1869 = vmatprep.subr.mxu1 %v2156_v0  ;;  %s1579_s18 = sshll.u32 %s345_s8, 4  ;;  %s1580_s18 = int_to_ptr.vmem [resolvable:$true] %s1579_s18 }
  0x22   : > { %1852 = vmatmul.mubr.msk.f32.vlgmr.msra.gmra.mxu0 %vm393_vm1, %v375_v9  ;;  %1870 = vmatpush3.msra.mxu1 %v2286_v10  ;;  %p2071_p0 = scmp.lt.s32.totalorder %s1580_s18, %s2069_s22 }
  0x23   : > { %1885 = vmatprep.subr.mxu0 %v2156_v0  ;;  %1872 = vmatmul.mubr.f32.vlgmr.msra.gmra.mxu1 %v2156_v0 }
  0x24   : > { %1874 = vmatprep.subr.mxu1 %v2156_v0  ;;  %1882 = vmatprep.mubr.msk.f32.mxu1 %vm2157_vm0, %v2156_v0 }
  0x25   : > { %1875 = vmatpush3.msra.mxu1 %v2276_v4  ;;  %1886 = vmatpush3.msra.mxu0 %v2276_v4 }
  0x26   : > { %1876 = vmatprep.subr.mxu1 %v2156_v0  ;;  %1887 = vmatprep.subr.mxu0 %v2156_v0 }
  0x27   : > { %1877 = vmatpush3.msra.mxu1 %v2274_v3  ;;  %1888 = vmatpush3.msra.mxu0 %v2274_v3 }
  0x28   : > { %1878 = vmatprep.subr.mxu1 %v2156_v0  ;;  %1889 = vmatprep.subr.mxu0 %v2156_v0 }
  0x29   : > { %1879 = vmatpush3.msra.mxu1 %v2281_v8  ;;  %1890 = vmatpush3.msra.mxu0 %v2281_v8 }
  0x2a   : > { %1880 = vmatprep.subr.mxu1 %v2156_v0  ;;  %1891 = vmatprep.subr.mxu0 %v2156_v0 }
  0x2b   : > { %1881 = vmatpush3.msra.mxu1 %v2286_v10  ;;  %1892 = vmatpush3.msra.mxu0 %v2286_v10 }
  0x2c   : > { %1896 = vmatprep.subr.mxu1 %v2156_v0  ;;  %1907 = vmatprep.subr.mxu0 %v2156_v0 }
  0x2d   : > { %1854 = vmatprep.mubr.msk.f32.mxu0 %vm393_vm1, %v376_v53 }
  0x2e   : > { %1855 = vmatmul.mubr.msk.f32.gmra.mxu0 %vm393_vm1, %v377_v54 }
  0x2f   : > { %1857 = vmatprep.mubr.msk.f32.mxu0 %vm393_vm1, %v378_v55 }
  0x32   : > { %1858 = vmatmul.mubr.msk.f32.gmra.mxu0 %vm393_vm1, %v379_v56 }
  0x33   : > { %1860 = vmatprep.mubr.msk.f32.mxu0 %vm393_vm1, %v380_v57 }
  0x36   : > { %1861 = vmatmul.mubr.msk.f32.gmra.mxu0 %vm393_vm1, %v381_v60 }
  0x37   : > { %1893 = vmatprep.mubr.msk.f32.mxu0 %vm2157_vm0, %v2156_v0 }
  0xe2   : > { %v1853_v11 = vpop.f32.mrf.mxu0 }
  0xe3   : > { %v605_v14 = vpop.f32.mrf.mxu1  ;;  %v490_v36 = vadd.f32 %v1853_v11, %v2318_v12 }
  0xe4   : > { %v484_v13 = vpop.f32.mrf.mxu0 }
  0xe5   : > { %v485_v15 = vadd.f32 %v2318_v12, %v484_v13  ;;  %v1873_v16 = vpop.f32.mrf.mxu1 }
  0xe7   : > { %v609_v17 = vadd.f32 %v605_v14, %v485_v15 }
  0xe9   : > { %2000 = vtanh.f32 %v609_v17  ;;  %v1765_v19 = vmul.f32 -1.442695, %v609_v17 }
  0xeb   : > { %2002 = vpow2.f32 %v1765_v19 }
  0xee   : > { %v1856_v11 = vpop.f32.mrf.mxu0 }
  0xf0   : > { %v494_v13 = vpop.f32.mrf.mxu0 }
  0xf2   : > { %v2400_v14 = vpop.f32.mrf.mxu0 }
  0xf4   : > { %v2402_v15 = vpop.f32.mrf.mxu0 }
  0xf6   : > { %v2001_v18 = vpop.eup %2000  ;;  %v2404_v16 = vpop.f32.mrf.mxu0 }
  0xf7   : > { %619 = vrot.lane.b32.xlu0 %v2001_v18, %s2158_s16  ;;  %v495_v18 = vadd.f32 %v2318_v12, %v494_v13 }
  0xf8   : > { %v2003_v20 = vpop.eup %2002  ;;  %v2406_v17 = vpop.f32.mrf.mxu0 }
  0xf9   : > { %v613_v21 = vadd.f32 1.0, %v2003_v20 }
  0xfb   : > { %2004 = vrcp.f32 %v613_v21 }
 0x108   : > { %v2005_v22 = vpop.eup %2004 }
 0x109   : > { %v617_v25 = vmul.f32 0.0, %v2005_v22 }
 0x169   : > { %v620_v23 = vpop.permute.xlu0 %619 }
 0x16a   : > { %v622_v24 = vmul.f32 %v2005_v22, %v620_v23 }
 0x16c   : > { %624 = vrot.lane.b32.xlu0 %v622_v24, %s2664_s13 }
 0x1de   : > { %v625_v26 = vpop.permute.xlu0 %624 }
 0x1df   : > { %v627_v27 = vadd.f32 %v625_v26, %v617_v25 }
 0x1e1   : > { %2006 = vtanh.f32 %v627_v27  ;;  %642 = vrot.lane.b32.xlu0 %v627_v27, %s2160_s17 }
 0x1ee   : > { %v2007_v28 = vpop.eup %2006 }
 0x1ef   : > { %630 = vrot.lane.b32.xlu1 %v2007_v28, %s2158_s16 }
 0x253   : > { %v643_v30 = vpop.permute.xlu0 %642 }
 0x254   : > { %v645_v31 = vmul.f32 %v643_v30, %v634_v29 }
 0x256   : > { %731 = vrot.lane.b32.xlu0 %v645_v31, %s2664_s13 }
 0x261   : > { %v631_v32 = vpop.permute.xlu1 %630 }
 0x262   : > { %v633_v33 = vmul.f32 %v2005_v22, %v631_v32 }
 0x264   : > { %636 = vrot.lane.b32.xlu1 %v633_v33, %s2664_s13 }
 0x2c8   : > { %v732_v47 = vpop.permute.xlu0 %731 }
 0x2d6   : > { %v637_v34 = vpop.permute.xlu1 %636 }
 0x2d7   : > { %v2340_v35 = vmul.f32 %v637_v34, %v634_v29 }
 0x2d9   : > { %647 = vst.msk [vmem:[%s2338_s23] sm:$0xff] %vm393_vm1, %v2340_v35  ;;  %1883 = vmatmul.mubr.msk.f32.vlgmr.msra.gmra.mxu1 %vm393_vm1, %v2340_v35 }
 0x2da   : > { %1897 = vmatpush3.msra.mxu1 %v2276_v4  ;;  %1904 = vmatprep.mubr.msk.f32.mxu1 %vm2157_vm0, %v2156_v0 }
 0x2db   : > { %1898 = vmatprep.subr.mxu1 %v2156_v0 }
 0x2dc   : > { %1899 = vmatpush3.msra.mxu1 %v2274_v3 }
 0x2dd   : > { %1900 = vmatprep.subr.mxu1 %v2156_v0 }
 0x2de   : > { %1901 = vmatpush3.msra.mxu1 %v2281_v8 }
 0x2df   : > { %1902 = vmatprep.subr.mxu1 %v2156_v0 }
 0x2e0   : > { %1903 = vmatpush3.msra.mxu1 %v2286_v10 }
 0x2e1   : > { %1918 = vmatprep.subr.mxu1 %v2156_v0 }
 0x399   : > { %v718_v37 = vpop.f32.mrf.mxu1 }
 0x39a   : > { %v722_v38 = vadd.f32 %v718_v37, %v490_v36  ;;  %v2415_v36 = vld [vmem:[%s2329_s20 + $0x10] sm:$0xff] }
 0x39b   : > { %v1884_v39 = vpop.f32.mrf.mxu1 }
 0x39c   : > { %2008 = vtanh.f32 %v722_v38  ;;  %v1767_v41 = vmul.f32 -1.442695, %v722_v38 }
 0x39e   : > { %2010 = vpow2.f32 %v1767_v41 }
 0x3a9   : > { %v2009_v40 = vpop.eup %2008 }
 0x3aa   : > { %736 = vrot.lane.b32.xlu1 %v2009_v40, %s2158_s16 }
 0x3ab   : > { %v2011_v42 = vpop.eup %2010 }
 0x3ac   : > { %v726_v43 = vadd.f32 1.0, %v2011_v42 }
 0x3ae   : > { %2012 = vrcp.f32 %v726_v43 }
 0x3bb   : > { %v2013_v44 = vpop.eup %2012 }
 0x3bc   : > { %v734_v48 = vmul.f32 %v2013_v44, %v732_v47 }
 0x41c   : > { %v737_v45 = vpop.permute.xlu1 %736 }
 0x41d   : > { %v739_v46 = vmul.f32 %v2013_v44, %v737_v45 }
 0x41f   : > { %741 = vrot.lane.b32.xlu1 %v739_v46, %s2664_s13  ;;  %v500_v46 = vadd.f32 %v1856_v11, %v2318_v12 }
 0x423   : > { %752 = vrot.lane.b32.xlu1 %v2340_v35, %s2160_s17 }
 0x491   : > { %v742_v49 = vpop.permute.xlu1 %741 }
 0x492   : > { %v744_v50 = vadd.f32 %v742_v49, %v734_v48 }
 0x494   : > { %2014 = vtanh.f32 %v744_v50  ;;  %v762_v51 = vsub.f32 %v744_v50, %v732_v47 }
 0x495   : > { %v753_v58 = vpop.permute.xlu1 %752 }
 0x496   : > { %764 = vrot.lane.b32.xlu1 %v762_v51, %s2160_s17 }
 0x4a1   : > { %v2015_v52 = vpop.eup %2014 }
 0x4a2   : > { %747 = vrot.lane.b32.xlu0 %v2015_v52, %s2158_s16 }
 0x508   : > { %v765_v61 = vpop.permute.xlu1 %764 }
 0x509   : > { %v767_v62 = vmul.f32 %v765_v61, %v2374_v59 }
 0x50b   : > { %v768_v63 = vadd.f32 %v767_v62, %v645_v31 }
 0x50d   : > { %858 = vrot.lane.b32.xlu1 %v768_v63, %s2664_s13 }
 0x514   : > { %v748_v1 = vpop.permute.xlu0 %747 }
 0x515   : > { %v2383_v2 = vmul.f32 %v2013_v44, %v748_v1 }
 0x517   : > { %v755_v5 = vsub.f32 %v2383_v2, %v753_v58 }
 0x519   : > { %757 = vrot.lane.b32.xlu0 %v755_v5, %s2664_s13  ;;  %v2442_v5 = vld [vmem:[%s2329_s20 + $0x18] sm:$0xff] }
 0x57f   : > { %v859_v29 = vpop.permute.xlu1 %858 }
 0x58b   : > { %v758_v6 = vpop.permute.xlu0 %757 }
 0x58c   : > { %v760_v7 = vmul.f32 %v758_v6, %v2374_v59 }
 0x58e   : > { %v761_v9 = vadd.f32 %v760_v7, %v2340_v35 }
 0x590   : > { %1894 = vmatmul.mubr.msk.f32.vlgmr.msra.gmra.mxu0 %vm393_vm1, %v761_v9 }
 0x591   : > { %1908 = vmatpush3.msra.mxu0 %v2276_v4  ;;  %1915 = vmatprep.mubr.msk.f32.mxu0 %vm2157_vm0, %v2156_v0 }
 0x592   : > { %1909 = vmatprep.subr.mxu0 %v2156_v0 }
 0x593   : > { %1910 = vmatpush3.msra.mxu0 %v2274_v3 }
 0x594   : > { %1911 = vmatprep.subr.mxu0 %v2156_v0 }
 0x595   : > { %1912 = vmatpush3.msra.mxu0 %v2281_v8 }
 0x596   : > { %1913 = vmatprep.subr.mxu0 %v2156_v0 }
 0x597   : > { %1914 = vmatpush3.msra.mxu0 %v2286_v10 }
 0x598   : > { %1929 = vmatprep.subr.mxu0 %v2156_v0 }
 0x650   : > { %v845_v19 = vpop.f32.mrf.mxu0 }
 0x651   : > { %v849_v20 = vadd.f32 %v845_v19, %v495_v18 }
 0x652   : > { %v1895_v21 = vpop.f32.mrf.mxu0 }
 0x653   : > { %2016 = vtanh.f32 %v849_v20  ;;  %v1769_v23 = vmul.f32 -1.442695, %v849_v20 }
 0x655   : > { %2018 = vpow2.f32 %v1769_v23 }
 0x660   : > { %v2017_v22 = vpop.eup %2016 }
 0x661   : > { %863 = vrot.lane.b32.xlu0 %v2017_v22, %s2158_s16  ;;  %v505_v22 = vadd.f32 %v2318_v12, %v2402_v15 }
 0x662   : > { %v2019_v24 = vpop.eup %2018 }
 0x663   : > { %v853_v25 = vadd.f32 1.0, %v2019_v24 }
 0x665   : > { %2020 = vrcp.f32 %v853_v25 }
 0x672   : > { %v2021_v26 = vpop.eup %2020 }
 0x673   : > { %v861_v30 = vmul.f32 %v2021_v26, %v859_v29 }
 0x6d3   : > { %v864_v27 = vpop.permute.xlu0 %863 }
 0x6d4   : > { %v866_v28 = vmul.f32 %v2021_v26, %v864_v27 }
 0x6d6   : > { %868 = vrot.lane.b32.xlu0 %v866_v28, %s2664_s13 }
 0x6da   : > { %879 = vrot.lane.b32.xlu0 %v761_v9, %s2160_s17 }
 0x748   : > { %v869_v31 = vpop.permute.xlu0 %868 }
 0x749   : > { %v871_v32 = vadd.f32 %v869_v31, %v861_v30 }
 0x74b   : > { %2022 = vtanh.f32 %v871_v32  ;;  %v889_v33 = vsub.f32 %v871_v32, %v859_v29 }
 0x74c   : > { %v880_v35 = vpop.permute.xlu0 %879 }
 0x74d   : > { %891 = vrot.lane.b32.xlu0 %v889_v33, %s2160_s17 }
 0x758   : > { %v2023_v34 = vpop.eup %2022 }
 0x759   : > { %874 = vrot.lane.b32.xlu1 %v2023_v34, %s2158_s16 }
 0x7bf   : > { %v892_v37 = vpop.permute.xlu0 %891 }
 0x7c0   : > { %v894_v38 = vmul.f32 %v892_v37, %v2415_v36 }
 0x7c2   : > { %v895_v39 = vadd.f32 %v894_v38, %v768_v63 }
 0x7c4   : > { %985 = vrot.lane.b32.xlu0 %v895_v39, %s2664_s13 }
 0x7cb   : > { %v875_v40 = vpop.permute.xlu1 %874 }
 0x7cc   : > { %v2419_v41 = vmul.f32 %v2021_v26, %v875_v40  ;;  %v2469_v40 = vld [vmem:[%s2329_s20 + $0x20] sm:$0xff] }
 0x7ce   : > { %v882_v42 = vsub.f32 %v2419_v41, %v880_v35 }
 0x7d0   : > { %884 = vrot.lane.b32.xlu1 %v882_v42, %s2664_s13 }
 0x836   : > { %v986_v57 = vpop.permute.xlu0 %985 }
 0x842   : > { %v885_v43 = vpop.permute.xlu1 %884 }
 0x843   : > { %v887_v44 = vmul.f32 %v885_v43, %v2415_v36 }
 0x845   : > { %v888_v45 = vadd.f32 %v887_v44, %v761_v9 }
 0x847   : > { %1905 = vmatmul.mubr.msk.f32.vlgmr.msra.gmra.mxu1 %vm393_vm1, %v888_v45 }
 0x848   : > { %1919 = vmatpush3.msra.mxu1 %v2276_v4  ;;  %1926 = vmatprep.mubr.msk.f32.mxu1 %vm2157_vm0, %v2156_v0 }
 0x849   : > { %1920 = vmatprep.subr.mxu1 %v2156_v0 }
 0x84a   : > { %1921 = vmatpush3.msra.mxu1 %v2274_v3 }
 0x84b   : > { %1922 = vmatprep.subr.mxu1 %v2156_v0 }
 0x84c   : > { %1923 = vmatpush3.msra.mxu1 %v2281_v8 }
 0x84d   : > { %1924 = vmatprep.subr.mxu1 %v2156_v0 }
 0x84e   : > { %1925 = vmatpush3.msra.mxu1 %v2286_v10 }
 0x84f   : > { %1940 = vmatprep.subr.mxu1 %v2156_v0 }
 0x907   : > { %v972_v47 = vpop.f32.mrf.mxu1 }
 0x908   : > { %v976_v48 = vadd.f32 %v972_v47, %v500_v46 }
 0x909   : > { %v1906_v49 = vpop.f32.mrf.mxu1 }
 0x90a   : > { %2024 = vtanh.f32 %v976_v48  ;;  %v1771_v51 = vmul.f32 -1.442695, %v976_v48 }
 0x90c   : > { %2026 = vpow2.f32 %v1771_v51  ;;  %v510_v51 = vadd.f32 %v2400_v14, %v2318_v12 }
 0x917   : > { %v2025_v50 = vpop.eup %2024 }
 0x918   : > { %990 = vrot.lane.b32.xlu1 %v2025_v50, %s2158_s16 }
 0x919   : > { %v2027_v52 = vpop.eup %2026 }
 0x91a   : > { %v980_v53 = vadd.f32 1.0, %v2027_v52 }
 0x91c   : > { %2028 = vrcp.f32 %v980_v53 }
 0x929   : > { %v2029_v54 = vpop.eup %2028 }
 0x92a   : > { %v988_v58 = vmul.f32 %v2029_v54, %v986_v57 }
 0x98a   : > { %v991_v55 = vpop.permute.xlu1 %990 }
 0x98b   : > { %v993_v56 = vmul.f32 %v2029_v54, %v991_v55 }
 0x98d   : > { %995 = vrot.lane.b32.xlu1 %v993_v56, %s2664_s13 }
 0x991   : > { %1006 = vrot.lane.b32.xlu1 %v888_v45, %s2160_s17 }
 0x9ff   : > { %v996_v60 = vpop.permute.xlu1 %995 }
 0xa00   : > { %v998_v61 = vadd.f32 %v996_v60, %v988_v58 }
 0xa02   : > { %2030 = vtanh.f32 %v998_v61  ;;  %v1016_v62 = vsub.f32 %v998_v61, %v986_v57 }
 0xa03   : > { %v1007_v1 = vpop.permute.xlu1 %1006 }
 0xa04   : > { %1018 = vrot.lane.b32.xlu1 %v1016_v62, %s2160_s17 }
 0xa0f   : > { %v2031_v63 = vpop.eup %2030 }
 0xa10   : > { %1001 = vrot.lane.b32.xlu0 %v2031_v63, %s2158_s16 }
 0xa76   : > { %v1019_v6 = vpop.permute.xlu1 %1018 }
 0xa77   : > { %v1021_v7 = vmul.f32 %v1019_v6, %v2442_v5 }
 0xa79   : > { %v1022_v9 = vadd.f32 %v1021_v7, %v895_v39 }
 0xa7b   : > { %1112 = vrot.lane.b32.xlu1 %v1022_v9, %s2664_s13 }
 0xa82   : > { %v1002_v11 = vpop.permute.xlu0 %1001 }
 0xa83   : > { %v2446_v13 = vmul.f32 %v2029_v54, %v1002_v11 }
 0xa85   : > { %v1009_v18 = vsub.f32 %v2446_v13, %v1007_v1  ;;  %v2496_v1 = vld [vmem:[%s2329_s20 + $0x28] sm:$0xff] }
 0xa87   : > { %1011 = vrot.lane.b32.xlu0 %v1009_v18, %s2664_s13 }
 0xaed   : > { %v1113_v15 = vpop.permute.xlu1 %1112 }
 0xaf9   : > { %v1012_v19 = vpop.permute.xlu0 %1011 }
 0xafa   : > { %v1014_v20 = vmul.f32 %v1012_v19, %v2442_v5 }
 0xafc   : > { %v1015_v21 = vadd.f32 %v1014_v20, %v888_v45 }
 0xafe   : > { %1916 = vmatmul.mubr.msk.f32.vlgmr.msra.gmra.mxu0 %vm393_vm1, %v1015_v21 }
 0xaff   : > { %1930 = vmatpush3.msra.mxu0 %v2276_v4  ;;  %1937 = vmatprep.mubr.msk.f32.mxu0 %vm2157_vm0, %v2156_v0 }
 0xb00   : > { %1931 = vmatprep.subr.mxu0 %v2156_v0 }
 0xb01   : > { %1932 = vmatpush3.msra.mxu0 %v2274_v3 }
 0xb02   : > { %1933 = vmatprep.subr.mxu0 %v2156_v0 }
 0xb03   : > { %1934 = vmatpush3.msra.mxu0 %v2281_v8 }
 0xb04   : > { %1935 = vmatprep.subr.mxu0 %v2156_v0 }
 0xb05   : > { %1936 = vmatpush3.msra.mxu0 %v2286_v10 }
 0xbbe   : > { %v1099_v23 = vpop.f32.mrf.mxu0 }
 0xbbf   : > { %v1103_v24 = vadd.f32 %v1099_v23, %v505_v22  ;;  %v515_v23 = vadd.f32 %v2318_v12, %v2406_v17 }
 0xbc0   : > { %v1917_v25 = vpop.f32.mrf.mxu0 }
 0xbc1   : > { %2032 = vtanh.f32 %v1103_v24  ;;  %v1773_v27 = vmul.f32 -1.442695, %v1103_v24 }
 0xbc3   : > { %2034 = vpow2.f32 %v1773_v27 }
 0xbce   : > { %v2033_v26 = vpop.eup %2032 }
 0xbcf   : > { %1117 = vrot.lane.b32.xlu0 %v2033_v26, %s2158_s16 }
 0xbd0   : > { %v2035_v28 = vpop.eup %2034 }
 0xbd1   : > { %v1107_v29 = vadd.f32 1.0, %v2035_v28 }
 0xbd3   : > { %2036 = vrcp.f32 %v1107_v29 }
 0xbe0   : > { %v2037_v30 = vpop.eup %2036 }
 0xbe1   : > { %v1115_v33 = vmul.f32 %v2037_v30, %v1113_v15 }
 0xc41   : > { %v1118_v31 = vpop.permute.xlu0 %1117 }
 0xc42   : > { %v1120_v32 = vmul.f32 %v2037_v30, %v1118_v31 }
 0xc44   : > { %1122 = vrot.lane.b32.xlu0 %v1120_v32, %s2664_s13 }
 0xc48   : > { %1133 = vrot.lane.b32.xlu0 %v1015_v21, %s2160_s17 }
 0xcb6   : > { %v1123_v34 = vpop.permute.xlu0 %1122 }
 0xcb7   : > { %v1125_v35 = vadd.f32 %v1123_v34, %v1115_v33 }
 0xcb9   : > { %2038 = vtanh.f32 %v1125_v35  ;;  %v1143_v37 = vsub.f32 %v1125_v35, %v1113_v15 }
 0xcba   : > { %v1134_v39 = vpop.permute.xlu0 %1133 }
 0xcbb   : > { %1145 = vrot.lane.b32.xlu0 %v1143_v37, %s2160_s17 }
 0xcc6   : > { %v2039_v38 = vpop.eup %2038 }
 0xcc7   : > { %1128 = vrot.lane.b32.xlu1 %v2039_v38, %s2158_s16 }
 0xd2d   : > { %v1146_v42 = vpop.permute.xlu0 %1145 }
 0xd2e   : > { %v1148_v43 = vmul.f32 %v1146_v42, %v2469_v40  ;;  %v2514_v42 = vld [vmem:[%s2329_s20 + $0x30] sm:$0xff] }
 0xd30   : > { %v1149_v44 = vadd.f32 %v1148_v43, %v1022_v9 }
 0xd32   : > { %1239 = vrot.lane.b32.xlu0 %v1149_v44, %s2664_s13 }
 0xd39   : > { %v1129_v45 = vpop.permute.xlu1 %1128 }
 0xd3a   : > { %v2473_v46 = vmul.f32 %v2037_v30, %v1129_v45 }
 0xd3c   : > { %v1136_v47 = vsub.f32 %v2473_v46, %v1134_v39 }
 0xd3e   : > { %1138 = vrot.lane.b32.xlu1 %v1136_v47, %s2664_s13 }
 0xdb0   : > { %v1139_v48 = vpop.permute.xlu1 %1138 }
 0xdb1   : > { %v1141_v49 = vmul.f32 %v1139_v48, %v2469_v40 }
 0xdb3   : > { %v1142_v50 = vadd.f32 %v1141_v49, %v1015_v21 }
 0xdb5   : > { %1927 = vmatmul.mubr.msk.f32.vlgmr.msra.gmra.mxu1 %vm393_vm1, %v1142_v50 }
 0xdb6   : > { %1941 = vmatpush3.msra.mxu1 %v2276_v4  ;;  %1948 = vmatprep.mubr.msk.f32.mxu1 %vm2157_vm0, %v2156_v0 }
 0xdb7   : > { %1942 = vmatprep.subr.mxu1 %v2156_v0 }
 0xdb8   : > { %1943 = vmatpush3.msra.mxu1 %v2274_v3 }
 0xdb9   : > { %1944 = vmatprep.subr.mxu1 %v2156_v0 }
 0xdba   : > { %1945 = vmatpush3.msra.mxu1 %v2281_v8 }
 0xdbb   : > { %1946 = vmatprep.subr.mxu1 %v2156_v0 }
 0xdbc   : > { %1947 = vmatpush3.msra.mxu1 %v2286_v10  ;;  %v1240_v10 = vpop.permute.xlu0 %1239 }
 0xe75   : > { %v1226_v52 = vpop.f32.mrf.mxu1 }
 0xe76   : > { %v1230_v4 = vadd.f32 %v1226_v52, %v510_v51 }
 0xe77   : > { %v1928_v53 = vpop.f32.mrf.mxu1 }
 0xe78   : > { %2040 = vtanh.f32 %v1230_v4  ;;  %v1775_v55 = vmul.f32 -1.442695, %v1230_v4  ;;  %v520_v4 = vadd.f32 %v2404_v16, %v2318_v12 }
 0xe7a   : > { %2042 = vpow2.f32 %v1775_v55 }
 0xe85   : > { %v2041_v54 = vpop.eup %2040 }
 0xe86   : > { %1244 = vrot.lane.b32.xlu1 %v2041_v54, %s2158_s16 }
 0xe87   : > { %v2043_v3 = vpop.eup %2042 }
 0xe88   : > { %v1234_v56 = vadd.f32 1.0, %v2043_v3 }
 0xe8a   : > { %2044 = vrcp.f32 %v1234_v56 }
 0xe97   : > { %v2045_v8 = vpop.eup %2044 }
 0xe98   : > { %v1242_v14 = vmul.f32 %v2045_v8, %v1240_v10 }
 0xef8   : > { %v1245_v0 = vpop.permute.xlu1 %1244 }
 0xef9   : > { %v1247_v57 = vmul.f32 %v2045_v8, %v1245_v0 }
 0xefb   : > { %1249 = vrot.lane.b32.xlu1 %v1247_v57, %s2664_s13 }
 0xeff   : > { %1260 = vrot.lane.b32.xlu1 %v1142_v50, %s2160_s17 }
 0xf6d   : > { %v1250_v58 = vpop.permute.xlu1 %1249 }
 0xf6e   : > { %v1252_v60 = vadd.f32 %v1250_v58, %v1242_v14 }
 0xf70   : > { %2046 = vtanh.f32 %v1252_v60  ;;  %v1270_v61 = vsub.f32 %v1252_v60, %v1240_v10 }
 0xf71   : > { %v1261_v63 = vpop.permute.xlu1 %1260 }
 0xf72   : > { %1272 = vrot.lane.b32.xlu1 %v1270_v61, %s2160_s17 }
 0xf7d   : > { %v2047_v62 = vpop.eup %2046 }
 0xf7e   : > { %1255 = vrot.lane.b32.xlu0 %v2047_v62, %s2158_s16 }
 0xfe4   : > { %v1273_v6 = vpop.permute.xlu1 %1272 }
 0xfe5   : > { %v1275_v7 = vmul.f32 %v1273_v6, %v2496_v1 }
 0xfe7   : > { %v1276_v9 = vadd.f32 %v1275_v7, %v1149_v44 }
 0xfe9   : > { %1366 = vrot.lane.b32.xlu1 %v1276_v9, %s2664_s13 }
 0xff0   : > { %v1256_v11 = vpop.permute.xlu0 %1255 }
 0xff1   : > { %v2500_v18 = vmul.f32 %v2045_v8, %v1256_v11 }
 0xff3   : > { %v1263_v19 = vsub.f32 %v2500_v18, %v1261_v63 }
 0xff5   : > { %1265 = vrot.lane.b32.xlu0 %v1263_v19, %s2664_s13 }
0x105b   : > { %v1367_v17 = vpop.permute.xlu1 %1366 }
0x1067   : > { %v1266_v20 = vpop.permute.xlu0 %1265 }
0x1068   : > { %v1268_v21 = vmul.f32 %v1266_v20, %v2496_v1 }
0x106a   : > { %v1269_v22 = vadd.f32 %v1268_v21, %v1142_v50 }
0x106c   : > { %1938 = vmatmul.mubr.msk.f32.vlgmr.msra.gmra.mxu0 %vm393_vm1, %v1269_v22 }
0x112c   : > { %v1353_v24 = vpop.f32.mrf.mxu0 }
0x112d   : > { %v1357_v25 = vadd.f32 %v1353_v24, %v515_v23 }
0x112e   : > { %v1939_v26 = vpop.f32.mrf.mxu0 }
0x112f   : > { %2048 = vtanh.f32 %v1357_v25  ;;  %v1777_v28 = vmul.f32 -1.442695, %v1357_v25 }
0x1131   : > { %2050 = vpow2.f32 %v1777_v28 }
0x113c   : > { %v2049_v27 = vpop.eup %2048 }
0x113d   : > { %1371 = vrot.lane.b32.xlu0 %v2049_v27, %s2158_s16 }
0x113e   : > { %v2051_v29 = vpop.eup %2050 }
0x113f   : > { %v1361_v30 = vadd.f32 1.0, %v2051_v29 }
0x1141   : > { %2052 = vrcp.f32 %v1361_v30 }
0x114e   : > { %v2053_v31 = vpop.eup %2052 }
0x114f   : > { %v1369_v33 = vmul.f32 %v2053_v31, %v1367_v17 }
0x11af   : > { %v1372_v32 = vpop.permute.xlu0 %1371 }
0x11b0   : > { %v1374_v15 = vmul.f32 %v2053_v31, %v1372_v32 }
0x11b2   : > { %1376 = vrot.lane.b32.xlu0 %v1374_v15, %s2664_s13 }
0x11b6   : > { %1387 = vrot.lane.b32.xlu0 %v1269_v22, %s2160_s17 }
0x1224   : > { %v1377_v34 = vpop.permute.xlu0 %1376 }
0x1225   : > { %v1379_v35 = vadd.f32 %v1377_v34, %v1369_v33 }
0x1227   : > { %2054 = vtanh.f32 %v1379_v35  ;;  %v1397_v37 = vsub.f32 %v1379_v35, %v1367_v17 }
0x1228   : > { %v1388_v39 = vpop.permute.xlu0 %1387 }
0x1229   : > { %1399 = vrot.lane.b32.xlu0 %v1397_v37, %s2160_s17 }
0x1234   : > { %v2055_v38 = vpop.eup %2054 }
0x1235   : > { %1382 = vrot.lane.b32.xlu1 %v2055_v38, %s2158_s16 }
0x129b   : > { %v1400_v43 = vpop.permute.xlu0 %1399 }
0x129c   : > { %v1402_v44 = vmul.f32 %v1400_v43, %v2514_v42 }
0x129e   : > { %v1403_v45 = vadd.f32 %v1402_v44, %v1276_v9 }
0x12a0   : > { %1493 = vrot.lane.b32.xlu0 %v1403_v45, %s2664_s13 }
0x12a7   : > { %v1383_v47 = vpop.permute.xlu1 %1382 }
0x12a8   : > { %v1385_v48 = vmul.f32 %v2053_v31, %v1383_v47 }
0x12aa   : > { %v1390_v49 = vsub.f32 %v1385_v48, %v1388_v39 }
0x12ac   : > { %1392 = vrot.lane.b32.xlu1 %v1390_v49, %s2664_s13 }
0x1312   : > { %v1494_v12 = vpop.permute.xlu0 %1493 }
0x131e   : > { %v1393_v50 = vpop.permute.xlu1 %1392 }
0x131f   : > { %v1395_v51 = vmul.f32 %v1393_v50, %v2514_v42 }
0x1321   : > { %v2520_v52 = vadd.f32 %v1395_v51, %v1269_v22 }
0x1323   : > { %1949 = vmatmul.mubr.msk.f32.vlgmr.msra.gmra.mxu1 %vm393_vm1, %v2520_v52 }
0x13e3   : > { %v1480_v53 = vpop.f32.mrf.mxu1 }
0x13e4   : > { %v1484_v54 = vadd.f32 %v1480_v53, %v520_v4 }
0x13e5   : > { %v1950_v55 = vpop.f32.mrf.mxu1 }
0x13e6   : > { %2056 = vtanh.f32 %v1484_v54  ;;  %v1779_v56 = vmul.f32 -1.442695, %v1484_v54 }
0x13e8   : > { %2058 = vpow2.f32 %v1779_v56 }
0x13f3   : > { %v2057_v3 = vpop.eup %2056 }
0x13f4   : > { %1498 = vrot.lane.b32.xlu1 %v2057_v3, %s2158_s16 }
0x13f5   : > { %v2059_v8 = vpop.eup %2058 }
0x13f6   : > { %v1488_v0 = vadd.f32 1.0, %v2059_v8 }
0x13f8   : > { %2060 = vrcp.f32 %v1488_v0 }
0x1405   : > { %v2061_v57 = vpop.eup %2060 }
0x1406   : > { %v1496_v16 = vmul.f32 %v2061_v57, %v1494_v12 }
0x1466   : > { %v1499_v10 = vpop.permute.xlu1 %1498 }
0x1467   : > { %v1501_v14 = vmul.f32 %v2061_v57, %v1499_v10 }
0x1469   : > { %1503 = vrot.lane.b32.xlu1 %v1501_v14, %s2664_s13 }
0x146d   : > { %1514 = vrot.lane.b32.xlu1 %v2520_v52, %s2160_s17 }
0x14db   : > { %v1504_v58 = vpop.permute.xlu1 %1503 }
0x14dc   : > { %v1506_v60 = vadd.f32 %v1504_v58, %v1496_v16 }
0x14de   : > { %2062 = vtanh.f32 %v1506_v60  ;;  %v1524_v61 = vsub.f32 %v1506_v60, %v1494_v12 }
0x14e0   : > { %1526 = vrot.lane.b32.xlu1 %v1524_v61, %s2160_s17  ;;  %s2566_s17 = scalar_lea.hbm %s2661_s7, %s2663_s9 }
0x14e4   : > { %897 = vrot.lane.b32.xlu1 %v2419_v41, %s2664_s13  ;;  %v1515_v41 = vpop.permute.xlu1 %1514 }
0x14e8   : > { %1151 = vrot.lane.b32.xlu1 %v2473_v46, %s2664_s13  ;;  %v2547_v46 = vld [vmem:[%s2329_s20 + $0x38] sm:$0xff]  ;;  %s2064_s20 = scalar_lea.vmem %s1580_s18, 128 }
0x14e9   : > { %p2065_p11 = scmp.ne.s32.totalorder %s1580_s18, %s2064_s20  ;;  %p2072_p1 = scmp.lt.s32.totalorder %s2070_s29, %s2064_s20 }
0x14eb   : > { %v2063_v62 = vpop.eup %2062  ;;  %p2066_p12 = pnand %p2065_p11, %p2241_p5  ;;  %p2073_p2 = por %p2072_p1, %p2071_p0 }
0x14ec   : > { %1405 = vrot.lane.b32.xlu1 %v1385_v48, %s2664_s13  ;;  %1509 = vrot.lane.b32.xlu0 %v2063_v62, %s2158_s16 }
0x14ed   : > { %p2067_p13 = pneg %p2066_p12 }
0x14ef   : > { %p2074_p3 = pnand %p2073_p2, %p2067_p13 }
0x14f0   : > { %770 = vrot.lane.b32.xlu0 %v2383_v2, %s2664_s13 }
0x14f4   : > { %1024 = vrot.lane.b32.xlu0 %v2446_v13, %s2664_s13 }
0x14f8   : > { %1278 = vrot.lane.b32.xlu0 %v2500_v18, %s2664_s13 }
0x1552   : > { %v1527_v63 = vpop.permute.xlu1 %1526 }
0x1553   : > { %v1529_v2 = vmul.f32 %v1527_v63, %v2547_v46 }
0x1555   : > { %v1530_v6 = vadd.f32 %v1529_v2, %v1403_v45 }
0x1556   : > { %v898_v7 = vpop.permute.xlu1 %897 }
0x1557   : > { %v900_v13 = vmul.f32 %v898_v7, %v2415_v36  ;;  %1538 = vst.msk [vmem:[%s345_s8] sm:$0xff] %vm393_vm1, %v1530_v6 }
0x1559   : > { %901 = vst.msk [vmem:[%s2338_s23 + $0x10] sm:$0xff] %vm393_vm1, %v900_v13 }
0x155a   : > { %v1152_v9 = vpop.permute.xlu1 %1151 }
0x155b   : > { %v1154_v11 = vmul.f32 %v1152_v9, %v2469_v40 }
0x155d   : > { %1155 = vst.msk [vmem:[%s2338_s23 + $0x20] sm:$0xff] %vm393_vm1, %v1154_v11 }
0x155e   : > { %v1406_v36 = vpop.permute.xlu1 %1405  ;;  %v1510_v18 = vpop.permute.xlu0 %1509 }
0x155f   : > { %v1408_v19 = vmul.f32 %v1406_v36, %v2514_v42  ;;  %v1512_v20 = vmul.f32 %v2061_v57, %v1510_v18 }
0x1560   : > { %2077 = shalt.err (!%p2074_p3)
}
0x1561   : > { %s2078_s8 = scalar_lea.hbm %s2566_s17, 128  ;;  %s2082_s21 = scalar_lea.hbm %s2661_s7, 256 }
0x1562   : > { %p2079_p4 = scmp.ne.s32.totalorder %s2566_s17, %s2078_s8  ;;  %p2083_p9 = scmp.lt.s32.totalorder %s2566_s17, %s2661_s7 }
0x1563   : > { %p2084_p10 = scmp.lt.s32.totalorder %s2082_s21, %s2078_s8 }
0x1564   : > { %p2080_p7 = pnand %p2079_p4, %p2241_p5 }
0x1565   : > { %p2085_p11 = por %p2084_p10, %p2083_p9 }
0x1566   : > { %p2081_p8 = pneg %p2080_p7 }
0x1568   : > { %p2086_p12 = pnand %p2085_p11, %p2081_p8 }
0x156a   : > { %2089 = shalt.err (!%p2086_p12)
}
0x156b   : > { %1952 = dma.vmem_to_hbm [thread:$0]  (%p2241_p5), %s1580_s18, 128, %s2566_s17, %s1550_s19   ;;  %1409 = vst.msk [vmem:[%s2338_s23 + $0x30] sm:$0xff] %vm393_vm1, %v1408_v19  ;;  %v1517_v40 = vsub.f32 %v1512_v20, %v1515_v41  ;;  %v771_v21 = vpop.permute.xlu0 %770 }
0x156c   : > { %v773_v22 = vmul.f32 %v771_v21, %v2374_v59  ;;  %s2668_s13 = smov 32   ;;  %s2669_s29 = sshll.u32 %s2544_s14, 3 }
0x156d   : > { %1519 = vrot.lane.b32.xlu0 %v1517_v40, %s2668_s13  ;;  %s338_s9 = scalar_lea.vmem [#allocation3], %s2669_s29  ;;  %s2670_s18 = sshll.u32 %s2224_s28, 7 }
0x156e   : > { %774 = vst.msk [vmem:[%s2338_s23 + $0x8] sm:$0xff] %vm393_vm1, %v773_v22  ;;  %s1566_s17 = sshll.u32 %s338_s9, 4  ;;  %s2608_s22 = scalar_lea.hbm %s2660_s6, %s2670_s18  ;;  %s2610_s17 = int_to_ptr.vmem [resolvable:$true] %s1566_s17 }
0x156f   : > { %v1025_v23 = vpop.permute.xlu0 %1024  ;;  %s1545_s8 = scalar_lea.sflag [#allocation4], %s2544_s14  ;;  %s2090_s15 = scalar_lea.vmem %s2610_s17, 128 }
0x1570   : > { %v1027_v24 = vmul.f32 %v1025_v23, %v2442_v5  ;;  %p2091_p13 = scmp.ne.s32.totalorder %s2610_s17, %s2090_s15  ;;  %s2162_s28 = smov [#allocation3]  }
0x1571   : > { %1532 = vrot.lane.b32.xlu0 %v1512_v20, %s2668_s13  ;;  %s2094_s16 = sshll.u32 %s2162_s28, 4  ;;  %s2095_s16 = int_to_ptr.vmem [resolvable:$false] %s2094_s16 }
0x1572   : > { %1028 = vst.msk [vmem:[%s2338_s23 + $0x18] sm:$0xff] %vm393_vm1, %v1027_v24  ;;  %p2092_p0 = pnand %p2091_p13, %p2241_p5  ;;  %s2096_s21 = scalar_lea.vmem %s2095_s16, 256 }
0x1573   : > { %v1279_v25 = vpop.permute.xlu0 %1278  ;;  %p2097_p2 = scmp.lt.s32.totalorder %s2610_s17, %s2095_s16  ;;  %p2098_p3 = scmp.lt.s32.totalorder %s2096_s21, %s2090_s15 }
0x1574   : > { %v1281_v26 = vmul.f32 %v1279_v25, %v2496_v1  ;;  %p2093_p1 = pneg %p2092_p0 }
0x1575   : > { %p2099_p4 = por %p2098_p3, %p2097_p2 }
0x1576   : > { %1282 = vst.msk [vmem:[%s2338_s23 + $0x28] sm:$0xff] %vm393_vm1, %v1281_v26 }
0x1577   : > { %p2100_p7 = pnand %p2099_p4, %p2093_p1 }
0x15df   : > { %v1520_v27 = vpop.permute.xlu0 %1519 }
0x15e0   : > { %v1522_v59 = vmul.f32 %v1520_v27, %v2547_v46 }
0x15e2   : > { %v1523_v28 = vadd.f32 %v1522_v59, %v2520_v52 }
0x15e3   : > { %v1533_v5 = vpop.permute.xlu0 %1532 }
0x15e4   : > { %v1535_v1 = vmul.f32 %v1533_v5, %v2547_v46  ;;  %1537 = vst.msk [vmem:[%s338_s9] sm:$0xff] %vm393_vm1, %v1523_v28 }
0x15e5   : > { %2103 = shalt.err (!%p2100_p7)
}
0x15e6   : > { %s2104_s13 = scalar_lea.hbm %s2608_s22, 128  ;;  %s2108_s9 = scalar_lea.hbm %s2660_s6, 256 }
0x15e7   : > { %p2105_p8 = scmp.ne.s32.totalorder %s2608_s22, %s2104_s13  ;;  %p2109_p11 = scmp.lt.s32.totalorder %s2608_s22, %s2660_s6 }
0x15e8   : > { %p2110_p12 = scmp.lt.s32.totalorder %s2108_s9, %s2104_s13 }
0x15e9   : > { %p2106_p9 = pnand %p2105_p8, %p2241_p5 }
0x15ea   : > { %p2111_p13 = por %p2110_p12, %p2109_p11 }
0x15eb   : > { %p2107_p10 = pneg %p2106_p9 }
0x15ed   : > { %p2112_p0 = pnand %p2111_p13, %p2107_p10 }
0x15ef   : > { %2115 = shalt.err (!%p2112_p0)
}
0x15f0   : > { %1951 = dma.vmem_to_hbm [thread:$0]  (%p2241_p5), %s2610_s17, 128, %s2608_s22, %s1545_s8   ;;  %1536 = vst.msk [vmem:[%s2338_s23 + $0x38] sm:$0xff] %vm393_vm1, %v1535_v1 }
0x15f1 PF: > { %p1962_p1 = scmp.ge.s32.totalorder %s2154_s27, 2  ;;  %s1599_s20 = sand.u32 1, %s2142_s24  }
0x15f2   : > { %s1600_s15 = scalar_lea.sflag [#allocation4], %s1599_s20 }
0x15f3   : > { %p1956_p2 = pnand %p1962_p1, %p2245_p6 }
0x15f5   : > { %p1957_p3 = pneg %p1956_p2 }
0x15f7   : > { %2133 = dma.done.wait (%p1957_p3), %s1600_s15, 128  }
0x15f8   : > { %2135 = vsyncadd (%p1957_p3), %s1600_s15, 4294967168  ;;  %s1609_s28 = scalar_lea.sflag [#allocation6], %s1599_s20 }
0x15f9   : > { %2137 = dma.done.wait (%p1957_p3), %s1609_s28, 128  }
0x15fa   : > { %2139 = vsyncadd (%p1957_p3), %s1609_s28, 4294967168  ;;  %p21_p5 = scmp.ge.s32.totalorder %s2228_s30, 4   ;;  %s2671_s24 = smov %s2146_s25 }
0x15fb   : > { %s2672_s25 = smov %s2150_s26  ;;  %s2673_s26 = smov %s2239_s10 }
0x15fc   : > { %s2674_s27 = smov %s2228_s30  ;;  %23 = sbr.rel (!%p21_p5) target bundleno = 5 (0x5), region = 116 }
0x1601   :  { %1614 = vsyncpa [#allocation4], 1 }
0x1602   :  { %1616 = vsyncpa [#allocation4 + $0x1], 1 }
0x1603   :  { %1617 = vsyncpa [#allocation6], 1 }
0x1604   :  { %1619 = vsyncpa [#allocation6 + $0x1], 1 }

</bundles_post_ra>
